<compile_context>
chip_gen: v6e
topology: v6e:2x2x1
jax: 0.10.0
libtpu: 0.0.40
codegen_flags: <defaults>
</compile_context>

<pallas_src>
import functools

import jax
import jax.numpy as jnp
from jax import lax
from jax.experimental import pallas as pl
from jax.experimental.pallas import tpu as pltpu


def _lstm_chunk_kernel(
    x_ref,      # (Bs, Tt, I)   compute dtype  batch-first time-chunk (streamed)
    wih0_ref,   # (I, 4H)       compute dtype
    whh0_ref,   # (H, 4H)       compute dtype
    wih1_ref,   # (H, 4H)       compute dtype
    whh1_ref,   # (H, 4H)       compute dtype
    b0_ref,     # (1, 4H)       f32   (b_ih_l0 + b_hh_l0)
    b1_ref,     # (1, 4H)       f32   (b_ih_l1 + b_hh_l1)
    wdT_ref,    # (O, H)        compute dtype  dense weight (out, in)
    bdT_ref,    # (O, 1)        f32
    out_ref,    # (Bs, O, Tt)   f32   time on the lane axis (lane-dense)
    state_sc,   # (4, Bs, H)    f32   [h0, c0, h1, c1] carried across chunks
    gx_sc,      # (Bs*Tt, 4H)   f32   hoisted layer-0 x-projection (+ bias)
    h1_sc,      # (Bs*Tt, H)    f32   layer-1 hidden outputs for this chunk
    *,
    unroll,
):
    Bs, Tt, _ = x_ref.shape
    H = state_sc.shape[2]
    cdt = x_ref.dtype                     # MXU operand dtype (bf16 or f32)

    # Zero initial hidden/cell state on the first time-chunk of each batch
    # shard (PyTorch default when h0/c0 are not provided).
    @pl.when(pl.program_id(1) == 0)
    def _init_state():
        state_sc[...] = jnp.zeros_like(state_sc)

    # ---- hoisted layer-0 input projection (one big-M matmul per batch row) ----
    b0 = b0_ref[...]                                              # (1, 4H) f32
    for b in range(Bs):                                           # Bs small & static
        gxb = jnp.dot(x_ref[b], wih0_ref[...],
                      preferred_element_type=jnp.float32) + b0    # (Tt, 4H) f32
        gx_sc[pl.ds(b * Tt, Tt), :] = gxb

    # Loop-invariant hoists.
    b1 = jnp.broadcast_to(b1_ref[...], (Bs, 4 * H))               # (Bs, 4H) f32

    def lstm_cell(gates, c_prev):
        # gates: (Bs, 4H) f32; PyTorch gate order [i, f, g, o].
        i = jax.nn.sigmoid(gates[:, 0 * H:1 * H])
        f = jax.nn.sigmoid(gates[:, 1 * H:2 * H])
        g = jnp.tanh(gates[:, 2 * H:3 * H])
        o = jax.nn.sigmoid(gates[:, 3 * H:4 * H])
        c_new = f * c_prev + i * g
        h_new = o * jnp.tanh(c_new)
        return h_new, c_new

    def step(t, carry):
        h0, c0, h1, c1 = carry

        # Precomputed x-projection rows for timestep t (loop-carried
        # independent -> the scheduler can issue these ahead of the chain).
        gx_t = jnp.concatenate(
            [gx_sc[pl.ds(b * Tt + t, 1), :] for b in range(Bs)], axis=0)  # (Bs, 4H)

        # ---- layer 0: only the recurrent projection sits on the serial path ----
        g0 = gx_t + jnp.dot(h0.astype(cdt), whh0_ref[...],
                            preferred_element_type=jnp.float32)
        h0, c0 = lstm_cell(g0, c0)

        # ---- layer 1: two dots, no lane concatenate ----
        g1 = (b1
              + jnp.dot(h0.astype(cdt), wih1_ref[...],
                        preferred_element_type=jnp.float32)
              + jnp.dot(h1.astype(cdt), whh1_ref[...],
                        preferred_element_type=jnp.float32))
        h1, c1 = lstm_cell(g1, c1)

        # Stash layer-1 output (f32) for the hoisted dense head.
        for b in range(Bs):
            h1_sc[pl.ds(b * Tt + t, 1), :] = h1[b:b + 1, :]
        return h0, c0, h1, c1

    carry0 = (state_sc[0], state_sc[1], state_sc[2], state_sc[3])
    h0, c0, h1, c1 = lax.fori_loop(0, Tt, step, carry0, unroll=unroll)

    # Write carried state back only at the chunk boundary.
    state_sc[0] = h0
    state_sc[1] = c0
    state_sc[2] = h1
    state_sc[3] = c1

    # ---- dense head, hoisted out of the recurrence; lane-dense (O, Tt) result ----
    wdT = wdT_ref[...]
    bdT = bdT_ref[...]
    for b in range(Bs):
        hb = h1_sc[pl.ds(b * Tt, Tt), :].astype(cdt)              # (Tt, H) aligned
        ybT = lax.dot_general(wdT, hb, (((1,), (1,)), ((), ())),
                              preferred_element_type=jnp.float32) + bdT   # (O, Tt)
        out_ref[b] = ybT.astype(out_ref.dtype)


@functools.partial(jax.jit,
                   static_argnames=("t_chunk", "compute_dtype", "batch_shards"))
def lstm_classifier_forward(x, params, *, t_chunk=256,
                            compute_dtype=jnp.bfloat16, batch_shards=1):
    """x: (B, T, input_size) f32, batch_first. Returns (B, T, output_size) f32."""
    B, T, I = x.shape
    H = params["whh0"].shape[0]
    O = params["wd"].shape[1]

    assert B % batch_shards == 0, (B, batch_shards)
    Bs = B // batch_shards

    # Time chunking: when more than one chunk is needed, the chunk length must
    # be a multiple of 128 so the lane-dense output block stays aligned.
    if T <= t_chunk:
        Tt = T
    else:
        Tt = max(128, (t_chunk // 128) * 128)
    T_pad = -(-T // Tt) * Tt
    num_chunks = T_pad // Tt

    xc = x.astype(compute_dtype)
    if T_pad != T:
        # TODO(synk): zero pad-steps pollute the carried final h/c (which this
        # module never returns); mask them if (h_n, c_n) is ever exposed.
        xc = jnp.concatenate(
            [xc, jnp.zeros((B, T_pad - T, I), compute_dtype)], axis=1)

    cdt = compute_dtype
    wih0 = params["wih0"].astype(cdt)
    whh0 = params["whh0"].astype(cdt)
    wih1 = params["wih1"].astype(cdt)
    whh1 = params["whh1"].astype(cdt)
    wdT = params["wd"].T.astype(cdt)              # (O, H)
    bdT = params["bd"].reshape(O, 1)              # (O, 1) f32

    # Deep unroll of the per-chunk recurrence.
    unroll = next(u for u in (16, 8, 4, 2, 1) if Tt % u == 0)

    # Advisory cost estimate (2 layers x 5 nonlinearities per step per row).
    flops = T_pad * B * (2 * I * 4 * H + 3 * (2 * H * 4 * H) + 2 * H * O)
    transc = T_pad * B * 10 * H
    itemsz = jnp.dtype(cdt).itemsize
    bytes_accessed = (
        xc.size * itemsz
        + B * O * T_pad * 4
        + (wih0.size + whh0.size + wih1.size + whh1.size + wdT.size) * itemsz
        + (params["b0"].size + params["b1"].size + bdT.size) * 4
    )

    kernel = functools.partial(_lstm_chunk_kernel, unroll=unroll)
    const = lambda s, t: (0, 0)

    out = pl.pallas_call(
        kernel,
        out_shape=jax.ShapeDtypeStruct((B, O, T_pad), jnp.float32),
        grid=(batch_shards, num_chunks),
        in_specs=[
            pl.BlockSpec((Bs, Tt, I), lambda s, t: (s, t, 0)),    # x: streamed chunks
            pl.BlockSpec((I, 4 * H), const),                      # resident weights
            pl.BlockSpec((H, 4 * H), const),
            pl.BlockSpec((H, 4 * H), const),
            pl.BlockSpec((H, 4 * H), const),
            pl.BlockSpec((1, 4 * H), const),
            pl.BlockSpec((1, 4 * H), const),
            pl.BlockSpec((O, H), const),
            pl.BlockSpec((O, 1), const),
        ],
        out_specs=pl.BlockSpec((Bs, O, Tt), lambda s, t: (s, 0, t)),
        scratch_shapes=[
            pltpu.VMEM((4, Bs, H), jnp.float32),        # carried [h0, c0, h1, c1]
            pltpu.VMEM((Bs * Tt, 4 * H), jnp.float32),  # hoisted x-projection (+b0)
            pltpu.VMEM((Bs * Tt, H), jnp.float32),      # layer-1 output slab (f32)
        ],
        compiler_params=pltpu.CompilerParams(
            # batch shards spread across cores (v7x); time carries the recurrence
            dimension_semantics=("parallel", "arbitrary"),
            vmem_limit_bytes=48 * 1024 * 1024,
        ),
        cost_estimate=pl.CostEstimate(
            flops=int(flops),
            transcendentals=int(transc),
            bytes_accessed=int(bytes_accessed),
        ),
    )(xc, wih0, whh0, wih1, whh1, params["b0"], params["b1"], wdT, bdT)

    # (B, O, T) -> (B, T, O); for O=1 this swap is a free reshape in XLA.
    return jnp.swapaxes(out[:, :, :T], 1, 2)


def init_params(key, input_size, hidden_dim, output_size):
    """Deterministic synthetic init mirroring LSTMClassifier.init_weights()."""
    initrange = 0.08
    ks = jax.random.split(key, 6)
    H, I, O = hidden_dim, input_size, output_size

    def uni(k, shape):
        return jax.random.uniform(k, shape, jnp.float32, -initrange, initrange)

    return {
        # layer 0: uniform(-0.08, 0.08), biases zero (as in init_weights)
        "wih0": uni(ks[0], (I, 4 * H)),
        "whh0": uni(ks[1], (H, 4 * H)),
        "b0": jnp.zeros((1, 4 * H), jnp.float32),
        # layer 1: module only re-inits l0; use the same deterministic scheme
        "wih1": uni(ks[2], (H, 4 * H)),
        "whh1": uni(ks[3], (H, 4 * H)),
        "b1": jnp.zeros((1, 4 * H), jnp.float32),
        # dense: weight ~ N(0, 1/sqrt(H)), bias = 0
        "wd": jax.random.normal(ks[4], (H, O), jnp.float32) / jnp.sqrt(float(H)),
        "bd": jnp.zeros((1, O), jnp.float32),
    }


def _reference_forward(x, params):
    """Pure-JAX reference (lax.scan) for sanity checking the kernel."""
    B, T, I = x.shape
    H = params["whh0"].shape[0]

    def cell(h, c, gates):
        i = jax.nn.sigmoid(gates[:, 0 * H:1 * H])
        f = jax.nn.sigmoid(gates[:, 1 * H:2 * H])
        g = jnp.tanh(gates[:, 2 * H:3 * H])
        o = jax.nn.sigmoid(gates[:, 3 * H:4 * H])
        c = f * c + i * g
        h = o * jnp.tanh(c)
        return h, c

    def step(carry, x_t):
        h0, c0, h1, c1 = carry
        g0 = x_t @ params["wih0"] + h0 @ params["whh0"] + params["b0"]
        h0, c0 = cell(h0, c0, g0)
        g1 = h0 @ params["wih1"] + h1 @ params["whh1"] + params["b1"]
        h1, c1 = cell(h1, c1, g1)
        y = h1 @ params["wd"] + params["bd"]
        return (h0, c0, h1, c1), y

    z = jnp.zeros((B, H), jnp.float32)
    _, ys = lax.scan(step, (z, z, z, z), jnp.transpose(x, (1, 0, 2)))
    return jnp.transpose(ys, (1, 0, 2))


if __name__ == "__main__":
    # Small shapes consistent with the module: batch=2, input_size=16,
    # hidden_dim=32, n_layers=2, output_size=1.
    B, I, H, O = 2, 16, 32, 1

    key = jax.random.PRNGKey(0)
    k_x1, k_x2, k_p = jax.random.split(key, 3)
    params = init_params(k_p, I, H, O)

    # --- small single-chunk sequence (seq=8), f32 operands: tight tolerance ---
    x_small = jax.random.normal(k_x1, (B, 8, I), jnp.float32)
    ref_small = _reference_forward(x_small, params)
    out_small = lstm_classifier_forward(x_small, params, t_chunk=8,
                                        compute_dtype=jnp.float32)
    out_small = jax.block_until_ready(out_small)
    assert out_small.shape == (B, 8, O), out_small.shape
    assert jnp.allclose(out_small, ref_small, atol=1e-5, rtol=1e-5), (
        float(jnp.max(jnp.abs(out_small - ref_small))))

    # --- longer sequence, 2 time chunks: exercises the cross-chunk h/c carry ---
    x_long = jax.random.normal(k_x2, (B, 256, I), jnp.float32)
    ref_long = _reference_forward(x_long, params)
    out_long = lstm_classifier_forward(x_long, params, t_chunk=128,
                                       compute_dtype=jnp.float32)
    out_long = jax.block_until_ready(out_long)
    assert out_long.shape == (B, 256, O), out_long.shape
    assert jnp.allclose(out_long, ref_long, atol=5e-4, rtol=5e-4), (
        float(jnp.max(jnp.abs(out_long - ref_long))))

    # --- v7x path: batch sharded over a "parallel" leading grid axis ---
    out_shard = lstm_classifier_forward(x_long, params, t_chunk=128,
                                        compute_dtype=jnp.float32,
                                        batch_shards=2)
    out_shard = jax.block_until_ready(out_shard)
    assert jnp.allclose(out_shard, ref_long, atol=5e-4, rtol=5e-4), (
        float(jnp.max(jnp.abs(out_shard - ref_long))))

    # --- default bf16 MXU-operand path (all generations); gate math stays f32 ---
    out_bf16 = lstm_classifier_forward(x_small, params, t_chunk=8)
    out_bf16 = jax.block_until_ready(out_bf16)
    assert out_bf16.shape == (B, 8, O), out_bf16.shape
    assert jnp.allclose(out_bf16, ref_small, atol=5e-2, rtol=5e-2), (
        float(jnp.max(jnp.abs(out_bf16 - ref_small))))

    print("KERNEL_OK")
</pallas_src>

<mosaic_0001>
module attributes {stable_mosaic.version = 11 : i64} {
  func.func @_lstm_chunk_kernel(%arg0: i32, %arg1: i32, %arg2: memref<2x8x16xf32, #tpu.memory_space<vmem>>, %arg3: memref<16x128xf32, #tpu.memory_space<vmem>>, %arg4: memref<32x128xf32, #tpu.memory_space<vmem>>, %arg5: memref<32x128xf32, #tpu.memory_space<vmem>>, %arg6: memref<32x128xf32, #tpu.memory_space<vmem>>, %arg7: memref<1x128xf32, #tpu.memory_space<vmem>>, %arg8: memref<1x128xf32, #tpu.memory_space<vmem>>, %arg9: memref<1x32xf32, #tpu.memory_space<vmem>>, %arg10: memref<1x1xf32, #tpu.memory_space<vmem>>, %arg11: memref<2x1x8xf32, #tpu.memory_space<vmem>>, %arg12: memref<4x2x32xf32, #tpu.memory_space<vmem>>, %arg13: memref<16x128xf32, #tpu.memory_space<vmem>>, %arg14: memref<16x32xf32, #tpu.memory_space<vmem>>) attributes {dimension_semantics = [#tpu.dimension_semantics<parallel>, #tpu.dimension_semantics<arbitrary>], iteration_bounds = array<i64: 1, 1>, scalar_prefetch = 0 : i64, scratch_operands = 3 : i64, tpu.core_type = #tpu.core_type<tc>, window_params = [{transform_indices = @transform_0, window_bounds = array<i64: 2, 8, 16>}, {pipeline_mode = #tpu.pipeline_mode<synchronous>, transform_indices = @transform_1, window_bounds = array<i64: 16, 128>}, {pipeline_mode = #tpu.pipeline_mode<synchronous>, transform_indices = @transform_2, window_bounds = array<i64: 32, 128>}, {pipeline_mode = #tpu.pipeline_mode<synchronous>, transform_indices = @transform_3, window_bounds = array<i64: 32, 128>}, {pipeline_mode = #tpu.pipeline_mode<synchronous>, transform_indices = @transform_4, window_bounds = array<i64: 32, 128>}, {pipeline_mode = #tpu.pipeline_mode<synchronous>, transform_indices = @transform_5, window_bounds = array<i64: 1, 128>}, {pipeline_mode = #tpu.pipeline_mode<synchronous>, transform_indices = @transform_6, window_bounds = array<i64: 1, 128>}, {pipeline_mode = #tpu.pipeline_mode<synchronous>, transform_indices = @transform_7, window_bounds = array<i64: 1, 32>}, {pipeline_mode = #tpu.pipeline_mode<synchronous>, transform_indices = @transform_8, window_bounds = array<i64: 1, 1>}, {transform_indices = @transform_9, window_bounds = array<i64: 2, 1, 8>}]} {
    %c0_i32 = arith.constant 0 : i32
    %0 = arith.cmpi eq, %arg1, %c0_i32 : i32
    %1 = arith.extui %0 : i1 to i32
    %c0_i32_0 = arith.constant 0 : i32
    %2 = arith.cmpi ne, %1, %c0_i32_0 : i32
    scf.if %2 {
      %cst_240 = arith.constant 0.000000e+00 : f32
      %649 = vector.broadcast %cst_240 : f32 to vector<4x2x32xf32>
      %c0_241 = arith.constant 0 : index
      %c0_242 = arith.constant 0 : index
      %c0_243 = arith.constant 0 : index
      %650 = vector.load %arg12[%c0_241, %c0_242, %c0_243] : memref<4x2x32xf32, #tpu.memory_space<vmem>>, vector<4x2x32xf32>
      tpu.vector_store %arg12[%c0_241, %c0_242, %c0_243], %649 {strides = array<i32>} : memref<4x2x32xf32, #tpu.memory_space<vmem>>, vector<4x2x32xf32>,
    } else {
    }
    %c0 = arith.constant 0 : index
    %c0_1 = arith.constant 0 : index
    %3 = vector.load %arg7[%c0, %c0_1] : memref<1x128xf32, #tpu.memory_space<vmem>>, vector<1x128xf32>
    %c0_2 = arith.constant 0 : index
    %c0_3 = arith.constant 0 : index
    %c0_4 = arith.constant 0 : index
    %4 = vector.load %arg2[%c0_2, %c0_3, %c0_4] : memref<2x8x16xf32, #tpu.memory_space<vmem>>, vector<1x8x16xf32>
    %5 = vector.shape_cast %4 : vector<1x8x16xf32> to vector<8x16xf32>
    %c0_5 = arith.constant 0 : index
    %c0_6 = arith.constant 0 : index
    %6 = vector.load %arg3[%c0_5, %c0_6] : memref<16x128xf32, #tpu.memory_space<vmem>>, vector<16x128xf32>
    %cst = arith.constant dense<0.000000e+00> : vector<8x128xf32>
    %7 = tpu.matmul %5, %6, %cst {dimension_numbers = #tpu.dot_dimension_numbers<[1], [0], [0], [1], [0, 0, 1, 1], [], []>} : vector<8x16xf32>, vector<16x128xf32>, vector<8x128xf32> -> vector<8x128xf32>
    %8 = vector.broadcast %3 : vector<1x128xf32> to vector<8x128xf32>
    %9 = arith.addf %7, %8 : vector<8x128xf32>
    %c0_7 = arith.constant 0 : index
    %c0_8 = arith.constant 0 : index
    %10 = vector.load %arg13[%c0_7, %c0_8] : memref<16x128xf32, #tpu.memory_space<vmem>>, vector<8x128xf32>
    tpu.vector_store %arg13[%c0_7, %c0_8], %9 {strides = array<i32>} : memref<16x128xf32, #tpu.memory_space<vmem>>, vector<8x128xf32>,
    %c1 = arith.constant 1 : index
    %c0_9 = arith.constant 0 : index
    %c0_10 = arith.constant 0 : index
    %11 = vector.load %arg2[%c1, %c0_9, %c0_10] : memref<2x8x16xf32, #tpu.memory_space<vmem>>, vector<1x8x16xf32>
    %12 = vector.shape_cast %11 : vector<1x8x16xf32> to vector<8x16xf32>
    %c0_11 = arith.constant 0 : index
    %c0_12 = arith.constant 0 : index
    %13 = vector.load %arg3[%c0_11, %c0_12] : memref<16x128xf32, #tpu.memory_space<vmem>>, vector<16x128xf32>
    %cst_13 = arith.constant dense<0.000000e+00> : vector<8x128xf32>
    %14 = tpu.matmul %12, %13, %cst_13 {dimension_numbers = #tpu.dot_dimension_numbers<[1], [0], [0], [1], [0, 0, 1, 1], [], []>} : vector<8x16xf32>, vector<16x128xf32>, vector<8x128xf32> -> vector<8x128xf32>
    %15 = vector.broadcast %3 : vector<1x128xf32> to vector<8x128xf32>
    %16 = arith.addf %14, %15 : vector<8x128xf32>
    %c8 = arith.constant 8 : index
    %c0_14 = arith.constant 0 : index
    %17 = vector.load %arg13[%c8, %c0_14] : memref<16x128xf32, #tpu.memory_space<vmem>>, vector<8x128xf32>
    tpu.vector_store %arg13[%c8, %c0_14], %16 {strides = array<i32>} : memref<16x128xf32, #tpu.memory_space<vmem>>, vector<8x128xf32>,
    %c0_15 = arith.constant 0 : index
    %c0_16 = arith.constant 0 : index
    %18 = vector.load %arg8[%c0_15, %c0_16] : memref<1x128xf32, #tpu.memory_space<vmem>>, vector<1x128xf32>
    %19 = vector.shape_cast %18 : vector<1x128xf32> to vector<1x128xf32>
    %20 = vector.broadcast %19 : vector<1x128xf32> to vector<2x128xf32>
    %c0_17 = arith.constant 0 : index
    %c0_18 = arith.constant 0 : index
    %c0_19 = arith.constant 0 : index
    %21 = vector.load %arg12[%c0_17, %c0_18, %c0_19] : memref<4x2x32xf32, #tpu.memory_space<vmem>>, vector<1x2x32xf32>
    %22 = vector.shape_cast %21 : vector<1x2x32xf32> to vector<2x32xf32>
    %c1_20 = arith.constant 1 : index
    %c0_21 = arith.constant 0 : index
    %c0_22 = arith.constant 0 : index
    %23 = vector.load %arg12[%c1_20, %c0_21, %c0_22] : memref<4x2x32xf32, #tpu.memory_space<vmem>>, vector<1x2x32xf32>
    %24 = vector.shape_cast %23 : vector<1x2x32xf32> to vector<2x32xf32>
    %c2 = arith.constant 2 : index
    %c0_23 = arith.constant 0 : index
    %c0_24 = arith.constant 0 : index
    %25 = vector.load %arg12[%c2, %c0_23, %c0_24] : memref<4x2x32xf32, #tpu.memory_space<vmem>>, vector<1x2x32xf32>
    %26 = vector.shape_cast %25 : vector<1x2x32xf32> to vector<2x32xf32>
    %c3 = arith.constant 3 : index
    %c0_25 = arith.constant 0 : index
    %c0_26 = arith.constant 0 : index
    %27 = vector.load %arg12[%c3, %c0_25, %c0_26] : memref<4x2x32xf32, #tpu.memory_space<vmem>>, vector<1x2x32xf32>
    %28 = vector.shape_cast %27 : vector<1x2x32xf32> to vector<2x32xf32>
    %c0_i32_27 = arith.constant 0 : i32
    %c0_i32_28 = arith.constant 0 : i32
    %29 = arith.addi %c0_i32_28, %c0_i32_27 : i32
    %30 = arith.index_cast %29 : i32 to index
    %c0_29 = arith.constant 0 : index
    %31 = vector.load %arg13[%30, %c0_29] : memref<16x128xf32, #tpu.memory_space<vmem>>, vector<1x128xf32>
    %c8_i32 = arith.constant 8 : i32
    %32 = arith.addi %c8_i32, %c0_i32_27 : i32
    %33 = arith.index_cast %32 : i32 to index
    %c0_30 = arith.constant 0 : index
    %34 = vector.load %arg13[%33, %c0_30] : memref<16x128xf32, #tpu.memory_space<vmem>>, vector<1x128xf32>
    %35 = tpu.concatenate %31, %34 in 0 : vector<1x128xf32>, vector<1x128xf32> -> vector<2x128xf32>
    %c0_31 = arith.constant 0 : index
    %c0_32 = arith.constant 0 : index
    %36 = vector.load %arg4[%c0_31, %c0_32] : memref<32x128xf32, #tpu.memory_space<vmem>>, vector<32x128xf32>
    %cst_33 = arith.constant dense<0.000000e+00> : vector<2x128xf32>
    %37 = tpu.matmul %22, %36, %cst_33 {dimension_numbers = #tpu.dot_dimension_numbers<[1], [0], [0], [1], [0, 0, 1, 1], [], []>} : vector<2x32xf32>, vector<32x128xf32>, vector<2x128xf32> -> vector<2x128xf32>
    %38 = arith.addf %35, %37 : vector<2x128xf32>
    %39 = vector.extract_strided_slice %38 {offsets = [0, 0], sizes = [2, 32], strides = [1, 1]} : vector<2x128xf32> to vector<2x32xf32>
    %40 = arith.negf %39 : vector<2x32xf32>
    %41 = math.exp %40 : vector<2x32xf32>
    %cst_34 = arith.constant 1.000000e+00 : f32
    %42 = vector.broadcast %cst_34 : f32 to vector<2x32xf32>
    %43 = arith.addf %42, %41 : vector<2x32xf32>
    %44 = arith.divf %42, %43 : vector<2x32xf32>
    %45 = vector.extract_strided_slice %38 {offsets = [0, 32], sizes = [2, 32], strides = [1, 1]} : vector<2x128xf32> to vector<2x32xf32>
    %46 = arith.negf %45 : vector<2x32xf32>
    %47 = math.exp %46 : vector<2x32xf32>
    %cst_35 = arith.constant 1.000000e+00 : f32
    %48 = vector.broadcast %cst_35 : f32 to vector<2x32xf32>
    %49 = arith.addf %48, %47 : vector<2x32xf32>
    %50 = arith.divf %48, %49 : vector<2x32xf32>
    %51 = vector.extract_strided_slice %38 {offsets = [0, 64], sizes = [2, 32], strides = [1, 1]} : vector<2x128xf32> to vector<2x32xf32>
    %52 = math.tanh %51 : vector<2x32xf32>
    %53 = vector.extract_strided_slice %38 {offsets = [0, 96], sizes = [2, 32], strides = [1, 1]} : vector<2x128xf32> to vector<2x32xf32>
    %54 = arith.negf %53 : vector<2x32xf32>
    %55 = math.exp %54 : vector<2x32xf32>
    %cst_36 = arith.constant 1.000000e+00 : f32
    %56 = vector.broadcast %cst_36 : f32 to vector<2x32xf32>
    %57 = arith.addf %56, %55 : vector<2x32xf32>
    %58 = arith.divf %56, %57 : vector<2x32xf32>
    %59 = arith.mulf %50, %24 : vector<2x32xf32>
    %60 = arith.mulf %44, %52 : vector<2x32xf32>
    %61 = arith.addf %59, %60 : vector<2x32xf32>
    %62 = math.tanh %61 : vector<2x32xf32>
    %63 = arith.mulf %58, %62 : vector<2x32xf32>
    %c0_37 = arith.constant 0 : index
    %c0_38 = arith.constant 0 : index
    %64 = vector.load %arg5[%c0_37, %c0_38] : memref<32x128xf32, #tpu.memory_space<vmem>>, vector<32x128xf32>
    %cst_39 = arith.constant dense<0.000000e+00> : vector<2x128xf32>
    %65 = tpu.matmul %63, %64, %cst_39 {dimension_numbers = #tpu.dot_dimension_numbers<[1], [0], [0], [1], [0, 0, 1, 1], [], []>} : vector<2x32xf32>, vector<32x128xf32>, vector<2x128xf32> -> vector<2x128xf32>
    %66 = arith.addf %20, %65 : vector<2x128xf32>
    %c0_40 = arith.constant 0 : index
    %c0_41 = arith.constant 0 : index
    %67 = vector.load %arg6[%c0_40, %c0_41] : memref<32x128xf32, #tpu.memory_space<vmem>>, vector<32x128xf32>
    %cst_42 = arith.constant dense<0.000000e+00> : vector<2x128xf32>
    %68 = tpu.matmul %26, %67, %cst_42 {dimension_numbers = #tpu.dot_dimension_numbers<[1], [0], [0], [1], [0, 0, 1, 1], [], []>} : vector<2x32xf32>, vector<32x128xf32>, vector<2x128xf32> -> vector<2x128xf32>
    %69 = arith.addf %66, %68 : vector<2x128xf32>
    %70 = vector.extract_strided_slice %69 {offsets = [0, 0], sizes = [2, 32], strides = [1, 1]} : vector<2x128xf32> to vector<2x32xf32>
    %71 = arith.negf %70 : vector<2x32xf32>
    %72 = math.exp %71 : vector<2x32xf32>
    %cst_43 = arith.constant 1.000000e+00 : f32
    %73 = vector.broadcast %cst_43 : f32 to vector<2x32xf32>
    %74 = arith.addf %73, %72 : vector<2x32xf32>
    %75 = arith.divf %73, %74 : vector<2x32xf32>
    %76 = vector.extract_strided_slice %69 {offsets = [0, 32], sizes = [2, 32], strides = [1, 1]} : vector<2x128xf32> to vector<2x32xf32>
    %77 = arith.negf %76 : vector<2x32xf32>
    %78 = math.exp %77 : vector<2x32xf32>
    %cst_44 = arith.constant 1.000000e+00 : f32
    %79 = vector.broadcast %cst_44 : f32 to vector<2x32xf32>
    %80 = arith.addf %79, %78 : vector<2x32xf32>
    %81 = arith.divf %79, %80 : vector<2x32xf32>
    %82 = vector.extract_strided_slice %69 {offsets = [0, 64], sizes = [2, 32], strides = [1, 1]} : vector<2x128xf32> to vector<2x32xf32>
    %83 = math.tanh %82 : vector<2x32xf32>
    %84 = vector.extract_strided_slice %69 {offsets = [0, 96], sizes = [2, 32], strides = [1, 1]} : vector<2x128xf32> to vector<2x32xf32>
    %85 = arith.negf %84 : vector<2x32xf32>
    %86 = math.exp %85 : vector<2x32xf32>
    %cst_45 = arith.constant 1.000000e+00 : f32
    %87 = vector.broadcast %cst_45 : f32 to vector<2x32xf32>
    %88 = arith.addf %87, %86 : vector<2x32xf32>
    %89 = arith.divf %87, %88 : vector<2x32xf32>
    %90 = arith.mulf %81, %28 : vector<2x32xf32>
    %91 = arith.mulf %75, %83 : vector<2x32xf32>
    %92 = arith.addf %90, %91 : vector<2x32xf32>
    %93 = math.tanh %92 : vector<2x32xf32>
    %94 = arith.mulf %89, %93 : vector<2x32xf32>
    %95 = vector.extract_strided_slice %94 {offsets = [0, 0], sizes = [1, 32], strides = [1, 1]} : vector<2x32xf32> to vector<1x32xf32>
    %c0_i32_46 = arith.constant 0 : i32
    %96 = arith.addi %c0_i32_46, %c0_i32_27 : i32
    %97 = arith.index_cast %96 : i32 to index
    %c0_47 = arith.constant 0 : index
    %98 = vector.load %arg14[%97, %c0_47] : memref<16x32xf32, #tpu.memory_space<vmem>>, vector<1x32xf32>
    tpu.vector_store %arg14[%97, %c0_47], %95 {strides = array<i32>} : memref<16x32xf32, #tpu.memory_space<vmem>>, vector<1x32xf32>,
    %99 = vector.extract_strided_slice %94 {offsets = [1, 0], sizes = [1, 32], strides = [1, 1]} : vector<2x32xf32> to vector<1x32xf32>
    %c8_i32_48 = arith.constant 8 : i32
    %100 = arith.addi %c8_i32_48, %c0_i32_27 : i32
    %101 = arith.index_cast %100 : i32 to index
    %c0_49 = arith.constant 0 : index
    %102 = vector.load %arg14[%101, %c0_49] : memref<16x32xf32, #tpu.memory_space<vmem>>, vector<1x32xf32>
    tpu.vector_store %arg14[%101, %c0_49], %99 {strides = array<i32>} : memref<16x32xf32, #tpu.memory_space<vmem>>, vector<1x32xf32>,
    %c1_i32 = arith.constant 1 : i32
    %c0_i32_50 = arith.constant 0 : i32
    %103 = arith.addi %c0_i32_50, %c1_i32 : i32
    %104 = arith.index_cast %103 : i32 to index
    %c0_51 = arith.constant 0 : index
    %105 = vector.load %arg13[%104, %c0_51] : memref<16x128xf32, #tpu.memory_space<vmem>>, vector<1x128xf32>
    %c8_i32_52 = arith.constant 8 : i32
    %106 = arith.addi %c8_i32_52, %c1_i32 : i32
    %107 = arith.index_cast %106 : i32 to index
    %c0_53 = arith.constant 0 : index
    %108 = vector.load %arg13[%107, %c0_53] : memref<16x128xf32, #tpu.memory_space<vmem>>, vector<1x128xf32>
    %109 = tpu.concatenate %105, %108 in 0 : vector<1x128xf32>, vector<1x128xf32> -> vector<2x128xf32>
    %c0_54 = arith.constant 0 : index
    %c0_55 = arith.constant 0 : index
    %110 = vector.load %arg4[%c0_54, %c0_55] : memref<32x128xf32, #tpu.memory_space<vmem>>, vector<32x128xf32>
    %cst_56 = arith.constant dense<0.000000e+00> : vector<2x128xf32>
    %111 = tpu.matmul %63, %110, %cst_56 {dimension_numbers = #tpu.dot_dimension_numbers<[1], [0], [0], [1], [0, 0, 1, 1], [], []>} : vector<2x32xf32>, vector<32x128xf32>, vector<2x128xf32> -> vector<2x128xf32>
    %112 = arith.addf %109, %111 : vector<2x128xf32>
    %113 = vector.extract_strided_slice %112 {offsets = [0, 0], sizes = [2, 32], strides = [1, 1]} : vector<2x128xf32> to vector<2x32xf32>
    %114 = arith.negf %113 : vector<2x32xf32>
    %115 = math.exp %114 : vector<2x32xf32>
    %cst_57 = arith.constant 1.000000e+00 : f32
    %116 = vector.broadcast %cst_57 : f32 to vector<2x32xf32>
    %117 = arith.addf %116, %115 : vector<2x32xf32>
    %118 = arith.divf %116, %117 : vector<2x32xf32>
    %119 = vector.extract_strided_slice %112 {offsets = [0, 32], sizes = [2, 32], strides = [1, 1]} : vector<2x128xf32> to vector<2x32xf32>
    %120 = arith.negf %119 : vector<2x32xf32>
    %121 = math.exp %120 : vector<2x32xf32>
    %cst_58 = arith.constant 1.000000e+00 : f32
    %122 = vector.broadcast %cst_58 : f32 to vector<2x32xf32>
    %123 = arith.addf %122, %121 : vector<2x32xf32>
    %124 = arith.divf %122, %123 : vector<2x32xf32>
    %125 = vector.extract_strided_slice %112 {offsets = [0, 64], sizes = [2, 32], strides = [1, 1]} : vector<2x128xf32> to vector<2x32xf32>
    %126 = math.tanh %125 : vector<2x32xf32>
    %127 = vector.extract_strided_slice %112 {offsets = [0, 96], sizes = [2, 32], strides = [1, 1]} : vector<2x128xf32> to vector<2x32xf32>
    %128 = arith.negf %127 : vector<2x32xf32>
    %129 = math.exp %128 : vector<2x32xf32>
    %cst_59 = arith.constant 1.000000e+00 : f32
    %130 = vector.broadcast %cst_59 : f32 to vector<2x32xf32>
    %131 = arith.addf %130, %129 : vector<2x32xf32>
    %132 = arith.divf %130, %131 : vector<2x32xf32>
    %133 = arith.mulf %124, %61 : vector<2x32xf32>
    %134 = arith.mulf %118, %126 : vector<2x32xf32>
    %135 = arith.addf %133, %134 : vector<2x32xf32>
    %136 = math.tanh %135 : vector<2x32xf32>
    %137 = arith.mulf %132, %136 : vector<2x32xf32>
    %c0_60 = arith.constant 0 : index
    %c0_61 = arith.constant 0 : index
    %138 = vector.load %arg5[%c0_60, %c0_61] : memref<32x128xf32, #tpu.memory_space<vmem>>, vector<32x128xf32>
    %cst_62 = arith.constant dense<0.000000e+00> : vector<2x128xf32>
    %139 = tpu.matmul %137, %138, %cst_62 {dimension_numbers = #tpu.dot_dimension_numbers<[1], [0], [0], [1], [0, 0, 1, 1], [], []>} : vector<2x32xf32>, vector<32x128xf32>, vector<2x128xf32> -> vector<2x128xf32>
    %140 = arith.addf %20, %139 : vector<2x128xf32>
    %c0_63 = arith.constant 0 : index
    %c0_64 = arith.constant 0 : index
    %141 = vector.load %arg6[%c0_63, %c0_64] : memref<32x128xf32, #tpu.memory_space<vmem>>, vector<32x128xf32>
    %cst_65 = arith.constant dense<0.000000e+00> : vector<2x128xf32>
    %142 = tpu.matmul %94, %141, %cst_65 {dimension_numbers = #tpu.dot_dimension_numbers<[1], [0], [0], [1], [0, 0, 1, 1], [], []>} : vector<2x32xf32>, vector<32x128xf32>, vector<2x128xf32> -> vector<2x128xf32>
    %143 = arith.addf %140, %142 : vector<2x128xf32>
    %144 = vector.extract_strided_slice %143 {offsets = [0, 0], sizes = [2, 32], strides = [1, 1]} : vector<2x128xf32> to vector<2x32xf32>
    %145 = arith.negf %144 : vector<2x32xf32>
    %146 = math.exp %145 : vector<2x32xf32>
    %cst_66 = arith.constant 1.000000e+00 : f32
    %147 = vector.broadcast %cst_66 : f32 to vector<2x32xf32>
    %148 = arith.addf %147, %146 : vector<2x32xf32>
    %149 = arith.divf %147, %148 : vector<2x32xf32>
    %150 = vector.extract_strided_slice %143 {offsets = [0, 32], sizes = [2, 32], strides = [1, 1]} : vector<2x128xf32> to vector<2x32xf32>
    %151 = arith.negf %150 : vector<2x32xf32>
    %152 = math.exp %151 : vector<2x32xf32>
    %cst_67 = arith.constant 1.000000e+00 : f32
    %153 = vector.broadcast %cst_67 : f32 to vector<2x32xf32>
    %154 = arith.addf %153, %152 : vector<2x32xf32>
    %155 = arith.divf %153, %154 : vector<2x32xf32>
    %156 = vector.extract_strided_slice %143 {offsets = [0, 64], sizes = [2, 32], strides = [1, 1]} : vector<2x128xf32> to vector<2x32xf32>
    %157 = math.tanh %156 : vector<2x32xf32>
    %158 = vector.extract_strided_slice %143 {offsets = [0, 96], sizes = [2, 32], strides = [1, 1]} : vector<2x128xf32> to vector<2x32xf32>
    %159 = arith.negf %158 : vector<2x32xf32>
    %160 = math.exp %159 : vector<2x32xf32>
    %cst_68 = arith.constant 1.000000e+00 : f32
    %161 = vector.broadcast %cst_68 : f32 to vector<2x32xf32>
    %162 = arith.addf %161, %160 : vector<2x32xf32>
    %163 = arith.divf %161, %162 : vector<2x32xf32>
    %164 = arith.mulf %155, %92 : vector<2x32xf32>
    %165 = arith.mulf %149, %157 : vector<2x32xf32>
    %166 = arith.addf %164, %165 : vector<2x32xf32>
    %167 = math.tanh %166 : vector<2x32xf32>
    %168 = arith.mulf %163, %167 : vector<2x32xf32>
    %169 = vector.extract_strided_slice %168 {offsets = [0, 0], sizes = [1, 32], strides = [1, 1]} : vector<2x32xf32> to vector<1x32xf32>
    %c0_i32_69 = arith.constant 0 : i32
    %170 = arith.addi %c0_i32_69, %c1_i32 : i32
    %171 = arith.index_cast %170 : i32 to index
    %c0_70 = arith.constant 0 : index
    %172 = vector.load %arg14[%171, %c0_70] : memref<16x32xf32, #tpu.memory_space<vmem>>, vector<1x32xf32>
    tpu.vector_store %arg14[%171, %c0_70], %169 {strides = array<i32>} : memref<16x32xf32, #tpu.memory_space<vmem>>, vector<1x32xf32>,
    %173 = vector.extract_strided_slice %168 {offsets = [1, 0], sizes = [1, 32], strides = [1, 1]} : vector<2x32xf32> to vector<1x32xf32>
    %c8_i32_71 = arith.constant 8 : i32
    %174 = arith.addi %c8_i32_71, %c1_i32 : i32
    %175 = arith.index_cast %174 : i32 to index
    %c0_72 = arith.constant 0 : index
    %176 = vector.load %arg14[%175, %c0_72] : memref<16x32xf32, #tpu.memory_space<vmem>>, vector<1x32xf32>
    tpu.vector_store %arg14[%175, %c0_72], %173 {strides = array<i32>} : memref<16x32xf32, #tpu.memory_space<vmem>>, vector<1x32xf32>,
    %c2_i32 = arith.constant 2 : i32
    %c0_i32_73 = arith.constant 0 : i32
    %177 = arith.addi %c0_i32_73, %c2_i32 : i32
    %178 = arith.index_cast %177 : i32 to index
    %c0_74 = arith.constant 0 : index
    %179 = vector.load %arg13[%178, %c0_74] : memref<16x128xf32, #tpu.memory_space<vmem>>, vector<1x128xf32>
    %c8_i32_75 = arith.constant 8 : i32
    %180 = arith.addi %c8_i32_75, %c2_i32 : i32
    %181 = arith.index_cast %180 : i32 to index
    %c0_76 = arith.constant 0 : index
    %182 = vector.load %arg13[%181, %c0_76] : memref<16x128xf32, #tpu.memory_space<vmem>>, vector<1x128xf32>
    %183 = tpu.concatenate %179, %182 in 0 : vector<1x128xf32>, vector<1x128xf32> -> vector<2x128xf32>
    %c0_77 = arith.constant 0 : index
    %c0_78 = arith.constant 0 : index
    %184 = vector.load %arg4[%c0_77, %c0_78] : memref<32x128xf32, #tpu.memory_space<vmem>>, vector<32x128xf32>
    %cst_79 = arith.constant dense<0.000000e+00> : vector<2x128xf32>
    %185 = tpu.matmul %137, %184, %cst_79 {dimension_numbers = #tpu.dot_dimension_numbers<[1], [0], [0], [1], [0, 0, 1, 1], [], []>} : vector<2x32xf32>, vector<32x128xf32>, vector<2x128xf32> -> vector<2x128xf32>
    %186 = arith.addf %183, %185 : vector<2x128xf32>
    %187 = vector.extract_strided_slice %186 {offsets = [0, 0], sizes = [2, 32], strides = [1, 1]} : vector<2x128xf32> to vector<2x32xf32>
    %188 = arith.negf %187 : vector<2x32xf32>
    %189 = math.exp %188 : vector<2x32xf32>
    %cst_80 = arith.constant 1.000000e+00 : f32
    %190 = vector.broadcast %cst_80 : f32 to vector<2x32xf32>
    %191 = arith.addf %190, %189 : vector<2x32xf32>
    %192 = arith.divf %190, %191 : vector<2x32xf32>
    %193 = vector.extract_strided_slice %186 {offsets = [0, 32], sizes = [2, 32], strides = [1, 1]} : vector<2x128xf32> to vector<2x32xf32>
    %194 = arith.negf %193 : vector<2x32xf32>
    %195 = math.exp %194 : vector<2x32xf32>
    %cst_81 = arith.constant 1.000000e+00 : f32
    %196 = vector.broadcast %cst_81 : f32 to vector<2x32xf32>
    %197 = arith.addf %196, %195 : vector<2x32xf32>
    %198 = arith.divf %196, %197 : vector<2x32xf32>
    %199 = vector.extract_strided_slice %186 {offsets = [0, 64], sizes = [2, 32], strides = [1, 1]} : vector<2x128xf32> to vector<2x32xf32>
    %200 = math.tanh %199 : vector<2x32xf32>
    %201 = vector.extract_strided_slice %186 {offsets = [0, 96], sizes = [2, 32], strides = [1, 1]} : vector<2x128xf32> to vector<2x32xf32>
    %202 = arith.negf %201 : vector<2x32xf32>
    %203 = math.exp %202 : vector<2x32xf32>
    %cst_82 = arith.constant 1.000000e+00 : f32
    %204 = vector.broadcast %cst_82 : f32 to vector<2x32xf32>
    %205 = arith.addf %204, %203 : vector<2x32xf32>
    %206 = arith.divf %204, %205 : vector<2x32xf32>
    %207 = arith.mulf %198, %135 : vector<2x32xf32>
    %208 = arith.mulf %192, %200 : vector<2x32xf32>
    %209 = arith.addf %207, %208 : vector<2x32xf32>
    %210 = math.tanh %209 : vector<2x32xf32>
    %211 = arith.mulf %206, %210 : vector<2x32xf32>
    %c0_83 = arith.constant 0 : index
    %c0_84 = arith.constant 0 : index
    %212 = vector.load %arg5[%c0_83, %c0_84] : memref<32x128xf32, #tpu.memory_space<vmem>>, vector<32x128xf32>
    %cst_85 = arith.constant dense<0.000000e+00> : vector<2x128xf32>
    %213 = tpu.matmul %211, %212, %cst_85 {dimension_numbers = #tpu.dot_dimension_numbers<[1], [0], [0], [1], [0, 0, 1, 1], [], []>} : vector<2x32xf32>, vector<32x128xf32>, vector<2x128xf32> -> vector<2x128xf32>
    %214 = arith.addf %20, %213 : vector<2x128xf32>
    %c0_86 = arith.constant 0 : index
    %c0_87 = arith.constant 0 : index
    %215 = vector.load %arg6[%c0_86, %c0_87] : memref<32x128xf32, #tpu.memory_space<vmem>>, vector<32x128xf32>
    %cst_88 = arith.constant dense<0.000000e+00> : vector<2x128xf32>
    %216 = tpu.matmul %168, %215, %cst_88 {dimension_numbers = #tpu.dot_dimension_numbers<[1], [0], [0], [1], [0, 0, 1, 1], [], []>} : vector<2x32xf32>, vector<32x128xf32>, vector<2x128xf32> -> vector<2x128xf32>
    %217 = arith.addf %214, %216 : vector<2x128xf32>
    %218 = vector.extract_strided_slice %217 {offsets = [0, 0], sizes = [2, 32], strides = [1, 1]} : vector<2x128xf32> to vector<2x32xf32>
    %219 = arith.negf %218 : vector<2x32xf32>
    %220 = math.exp %219 : vector<2x32xf32>
    %cst_89 = arith.constant 1.000000e+00 : f32
    %221 = vector.broadcast %cst_89 : f32 to vector<2x32xf32>
    %222 = arith.addf %221, %220 : vector<2x32xf32>
    %223 = arith.divf %221, %222 : vector<2x32xf32>
    %224 = vector.extract_strided_slice %217 {offsets = [0, 32], sizes = [2, 32], strides = [1, 1]} : vector<2x128xf32> to vector<2x32xf32>
    %225 = arith.negf %224 : vector<2x32xf32>
    %226 = math.exp %225 : vector<2x32xf32>
    %cst_90 = arith.constant 1.000000e+00 : f32
    %227 = vector.broadcast %cst_90 : f32 to vector<2x32xf32>
    %228 = arith.addf %227, %226 : vector<2x32xf32>
    %229 = arith.divf %227, %228 : vector<2x32xf32>
    %230 = vector.extract_strided_slice %217 {offsets = [0, 64], sizes = [2, 32], strides = [1, 1]} : vector<2x128xf32> to vector<2x32xf32>
    %231 = math.tanh %230 : vector<2x32xf32>
    %232 = vector.extract_strided_slice %217 {offsets = [0, 96], sizes = [2, 32], strides = [1, 1]} : vector<2x128xf32> to vector<2x32xf32>
    %233 = arith.negf %232 : vector<2x32xf32>
    %234 = math.exp %233 : vector<2x32xf32>
    %cst_91 = arith.constant 1.000000e+00 : f32
    %235 = vector.broadcast %cst_91 : f32 to vector<2x32xf32>
    %236 = arith.addf %235, %234 : vector<2x32xf32>
    %237 = arith.divf %235, %236 : vector<2x32xf32>
    %238 = arith.mulf %229, %166 : vector<2x32xf32>
    %239 = arith.mulf %223, %231 : vector<2x32xf32>
    %240 = arith.addf %238, %239 : vector<2x32xf32>
    %241 = math.tanh %240 : vector<2x32xf32>
    %242 = arith.mulf %237, %241 : vector<2x32xf32>
    %243 = vector.extract_strided_slice %242 {offsets = [0, 0], sizes = [1, 32], strides = [1, 1]} : vector<2x32xf32> to vector<1x32xf32>
    %c0_i32_92 = arith.constant 0 : i32
    %244 = arith.addi %c0_i32_92, %c2_i32 : i32
    %245 = arith.index_cast %244 : i32 to index
    %c0_93 = arith.constant 0 : index
    %246 = vector.load %arg14[%245, %c0_93] : memref<16x32xf32, #tpu.memory_space<vmem>>, vector<1x32xf32>
    tpu.vector_store %arg14[%245, %c0_93], %243 {strides = array<i32>} : memref<16x32xf32, #tpu.memory_space<vmem>>, vector<1x32xf32>,
    %247 = vector.extract_strided_slice %242 {offsets = [1, 0], sizes = [1, 32], strides = [1, 1]} : vector<2x32xf32> to vector<1x32xf32>
    %c8_i32_94 = arith.constant 8 : i32
    %248 = arith.addi %c8_i32_94, %c2_i32 : i32
    %249 = arith.index_cast %248 : i32 to index
    %c0_95 = arith.constant 0 : index
    %250 = vector.load %arg14[%249, %c0_95] : memref<16x32xf32, #tpu.memory_space<vmem>>, vector<1x32xf32>
    tpu.vector_store %arg14[%249, %c0_95], %247 {strides = array<i32>} : memref<16x32xf32, #tpu.memory_space<vmem>>, vector<1x32xf32>,
    %c3_i32 = arith.constant 3 : i32
    %c0_i32_96 = arith.constant 0 : i32
    %251 = arith.addi %c0_i32_96, %c3_i32 : i32
    %252 = arith.index_cast %251 : i32 to index
    %c0_97 = arith.constant 0 : index
    %253 = vector.load %arg13[%252, %c0_97] : memref<16x128xf32, #tpu.memory_space<vmem>>, vector<1x128xf32>
    %c8_i32_98 = arith.constant 8 : i32
    %254 = arith.addi %c8_i32_98, %c3_i32 : i32
    %255 = arith.index_cast %254 : i32 to index
    %c0_99 = arith.constant 0 : index
    %256 = vector.load %arg13[%255, %c0_99] : memref<16x128xf32, #tpu.memory_space<vmem>>, vector<1x128xf32>
    %257 = tpu.concatenate %253, %256 in 0 : vector<1x128xf32>, vector<1x128xf32> -> vector<2x128xf32>
    %c0_100 = arith.constant 0 : index
    %c0_101 = arith.constant 0 : index
    %258 = vector.load %arg4[%c0_100, %c0_101] : memref<32x128xf32, #tpu.memory_space<vmem>>, vector<32x128xf32>
    %cst_102 = arith.constant dense<0.000000e+00> : vector<2x128xf32>
    %259 = tpu.matmul %211, %258, %cst_102 {dimension_numbers = #tpu.dot_dimension_numbers<[1], [0], [0], [1], [0, 0, 1, 1], [], []>} : vector<2x32xf32>, vector<32x128xf32>, vector<2x128xf32> -> vector<2x128xf32>
    %260 = arith.addf %257, %259 : vector<2x128xf32>
    %261 = vector.extract_strided_slice %260 {offsets = [0, 0], sizes = [2, 32], strides = [1, 1]} : vector<2x128xf32> to vector<2x32xf32>
    %262 = arith.negf %261 : vector<2x32xf32>
    %263 = math.exp %262 : vector<2x32xf32>
    %cst_103 = arith.constant 1.000000e+00 : f32
    %264 = vector.broadcast %cst_103 : f32 to vector<2x32xf32>
    %265 = arith.addf %264, %263 : vector<2x32xf32>
    %266 = arith.divf %264, %265 : vector<2x32xf32>
    %267 = vector.extract_strided_slice %260 {offsets = [0, 32], sizes = [2, 32], strides = [1, 1]} : vector<2x128xf32> to vector<2x32xf32>
    %268 = arith.negf %267 : vector<2x32xf32>
    %269 = math.exp %268 : vector<2x32xf32>
    %cst_104 = arith.constant 1.000000e+00 : f32
    %270 = vector.broadcast %cst_104 : f32 to vector<2x32xf32>
    %271 = arith.addf %270, %269 : vector<2x32xf32>
    %272 = arith.divf %270, %271 : vector<2x32xf32>
    %273 = vector.extract_strided_slice %260 {offsets = [0, 64], sizes = [2, 32], strides = [1, 1]} : vector<2x128xf32> to vector<2x32xf32>
    %274 = math.tanh %273 : vector<2x32xf32>
    %275 = vector.extract_strided_slice %260 {offsets = [0, 96], sizes = [2, 32], strides = [1, 1]} : vector<2x128xf32> to vector<2x32xf32>
    %276 = arith.negf %275 : vector<2x32xf32>
    %277 = math.exp %276 : vector<2x32xf32>
    %cst_105 = arith.constant 1.000000e+00 : f32
    %278 = vector.broadcast %cst_105 : f32 to vector<2x32xf32>
    %279 = arith.addf %278, %277 : vector<2x32xf32>
    %280 = arith.divf %278, %279 : vector<2x32xf32>
    %281 = arith.mulf %272, %209 : vector<2x32xf32>
    %282 = arith.mulf %266, %274 : vector<2x32xf32>
    %283 = arith.addf %281, %282 : vector<2x32xf32>
    %284 = math.tanh %283 : vector<2x32xf32>
    %285 = arith.mulf %280, %284 : vector<2x32xf32>
    %c0_106 = arith.constant 0 : index
    %c0_107 = arith.constant 0 : index
    %286 = vector.load %arg5[%c0_106, %c0_107] : memref<32x128xf32, #tpu.memory_space<vmem>>, vector<32x128xf32>
    %cst_108 = arith.constant dense<0.000000e+00> : vector<2x128xf32>
    %287 = tpu.matmul %285, %286, %cst_108 {dimension_numbers = #tpu.dot_dimension_numbers<[1], [0], [0], [1], [0, 0, 1, 1], [], []>} : vector<2x32xf32>, vector<32x128xf32>, vector<2x128xf32> -> vector<2x128xf32>
    %288 = arith.addf %20, %287 : vector<2x128xf32>
    %c0_109 = arith.constant 0 : index
    %c0_110 = arith.constant 0 : index
    %289 = vector.load %arg6[%c0_109, %c0_110] : memref<32x128xf32, #tpu.memory_space<vmem>>, vector<32x128xf32>
    %cst_111 = arith.constant dense<0.000000e+00> : vector<2x128xf32>
    %290 = tpu.matmul %242, %289, %cst_111 {dimension_numbers = #tpu.dot_dimension_numbers<[1], [0], [0], [1], [0, 0, 1, 1], [], []>} : vector<2x32xf32>, vector<32x128xf32>, vector<2x128xf32> -> vector<2x128xf32>
    %291 = arith.addf %288, %290 : vector<2x128xf32>
    %292 = vector.extract_strided_slice %291 {offsets = [0, 0], sizes = [2, 32], strides = [1, 1]} : vector<2x128xf32> to vector<2x32xf32>
    %293 = arith.negf %292 : vector<2x32xf32>
    %294 = math.exp %293 : vector<2x32xf32>
    %cst_112 = arith.constant 1.000000e+00 : f32
    %295 = vector.broadcast %cst_112 : f32 to vector<2x32xf32>
    %296 = arith.addf %295, %294 : vector<2x32xf32>
    %297 = arith.divf %295, %296 : vector<2x32xf32>
    %298 = vector.extract_strided_slice %291 {offsets = [0, 32], sizes = [2, 32], strides = [1, 1]} : vector<2x128xf32> to vector<2x32xf32>
    %299 = arith.negf %298 : vector<2x32xf32>
    %300 = math.exp %299 : vector<2x32xf32>
    %cst_113 = arith.constant 1.000000e+00 : f32
    %301 = vector.broadcast %cst_113 : f32 to vector<2x32xf32>
    %302 = arith.addf %301, %300 : vector<2x32xf32>
    %303 = arith.divf %301, %302 : vector<2x32xf32>
    %304 = vector.extract_strided_slice %291 {offsets = [0, 64], sizes = [2, 32], strides = [1, 1]} : vector<2x128xf32> to vector<2x32xf32>
    %305 = math.tanh %304 : vector<2x32xf32>
    %306 = vector.extract_strided_slice %291 {offsets = [0, 96], sizes = [2, 32], strides = [1, 1]} : vector<2x128xf32> to vector<2x32xf32>
    %307 = arith.negf %306 : vector<2x32xf32>
    %308 = math.exp %307 : vector<2x32xf32>
    %cst_114 = arith.constant 1.000000e+00 : f32
    %309 = vector.broadcast %cst_114 : f32 to vector<2x32xf32>
    %310 = arith.addf %309, %308 : vector<2x32xf32>
    %311 = arith.divf %309, %310 : vector<2x32xf32>
    %312 = arith.mulf %303, %240 : vector<2x32xf32>
    %313 = arith.mulf %297, %305 : vector<2x32xf32>
    %314 = arith.addf %312, %313 : vector<2x32xf32>
    %315 = math.tanh %314 : vector<2x32xf32>
    %316 = arith.mulf %311, %315 : vector<2x32xf32>
    %317 = vector.extract_strided_slice %316 {offsets = [0, 0], sizes = [1, 32], strides = [1, 1]} : vector<2x32xf32> to vector<1x32xf32>
    %c0_i32_115 = arith.constant 0 : i32
    %318 = arith.addi %c0_i32_115, %c3_i32 : i32
    %319 = arith.index_cast %318 : i32 to index
    %c0_116 = arith.constant 0 : index
    %320 = vector.load %arg14[%319, %c0_116] : memref<16x32xf32, #tpu.memory_space<vmem>>, vector<1x32xf32>
    tpu.vector_store %arg14[%319, %c0_116], %317 {strides = array<i32>} : memref<16x32xf32, #tpu.memory_space<vmem>>, vector<1x32xf32>,
    %321 = vector.extract_strided_slice %316 {offsets = [1, 0], sizes = [1, 32], strides = [1, 1]} : vector<2x32xf32> to vector<1x32xf32>
    %c8_i32_117 = arith.constant 8 : i32
    %322 = arith.addi %c8_i32_117, %c3_i32 : i32
    %323 = arith.index_cast %322 : i32 to index
    %c0_118 = arith.constant 0 : index
    %324 = vector.load %arg14[%323, %c0_118] : memref<16x32xf32, #tpu.memory_space<vmem>>, vector<1x32xf32>
    tpu.vector_store %arg14[%323, %c0_118], %321 {strides = array<i32>} : memref<16x32xf32, #tpu.memory_space<vmem>>, vector<1x32xf32>,
    %c4_i32 = arith.constant 4 : i32
    %c0_i32_119 = arith.constant 0 : i32
    %325 = arith.addi %c0_i32_119, %c4_i32 : i32
    %326 = arith.index_cast %325 : i32 to index
    %c0_120 = arith.constant 0 : index
    %327 = vector.load %arg13[%326, %c0_120] : memref<16x128xf32, #tpu.memory_space<vmem>>, vector<1x128xf32>
    %c8_i32_121 = arith.constant 8 : i32
    %328 = arith.addi %c8_i32_121, %c4_i32 : i32
    %329 = arith.index_cast %328 : i32 to index
    %c0_122 = arith.constant 0 : index
    %330 = vector.load %arg13[%329, %c0_122] : memref<16x128xf32, #tpu.memory_space<vmem>>, vector<1x128xf32>
    %331 = tpu.concatenate %327, %330 in 0 : vector<1x128xf32>, vector<1x128xf32> -> vector<2x128xf32>
    %c0_123 = arith.constant 0 : index
    %c0_124 = arith.constant 0 : index
    %332 = vector.load %arg4[%c0_123, %c0_124] : memref<32x128xf32, #tpu.memory_space<vmem>>, vector<32x128xf32>
    %cst_125 = arith.constant dense<0.000000e+00> : vector<2x128xf32>
    %333 = tpu.matmul %285, %332, %cst_125 {dimension_numbers = #tpu.dot_dimension_numbers<[1], [0], [0], [1], [0, 0, 1, 1], [], []>} : vector<2x32xf32>, vector<32x128xf32>, vector<2x128xf32> -> vector<2x128xf32>
    %334 = arith.addf %331, %333 : vector<2x128xf32>
    %335 = vector.extract_strided_slice %334 {offsets = [0, 0], sizes = [2, 32], strides = [1, 1]} : vector<2x128xf32> to vector<2x32xf32>
    %336 = arith.negf %335 : vector<2x32xf32>
    %337 = math.exp %336 : vector<2x32xf32>
    %cst_126 = arith.constant 1.000000e+00 : f32
    %338 = vector.broadcast %cst_126 : f32 to vector<2x32xf32>
    %339 = arith.addf %338, %337 : vector<2x32xf32>
    %340 = arith.divf %338, %339 : vector<2x32xf32>
    %341 = vector.extract_strided_slice %334 {offsets = [0, 32], sizes = [2, 32], strides = [1, 1]} : vector<2x128xf32> to vector<2x32xf32>
    %342 = arith.negf %341 : vector<2x32xf32>
    %343 = math.exp %342 : vector<2x32xf32>
    %cst_127 = arith.constant 1.000000e+00 : f32
    %344 = vector.broadcast %cst_127 : f32 to vector<2x32xf32>
    %345 = arith.addf %344, %343 : vector<2x32xf32>
    %346 = arith.divf %344, %345 : vector<2x32xf32>
    %347 = vector.extract_strided_slice %334 {offsets = [0, 64], sizes = [2, 32], strides = [1, 1]} : vector<2x128xf32> to vector<2x32xf32>
    %348 = math.tanh %347 : vector<2x32xf32>
    %349 = vector.extract_strided_slice %334 {offsets = [0, 96], sizes = [2, 32], strides = [1, 1]} : vector<2x128xf32> to vector<2x32xf32>
    %350 = arith.negf %349 : vector<2x32xf32>
    %351 = math.exp %350 : vector<2x32xf32>
    %cst_128 = arith.constant 1.000000e+00 : f32
    %352 = vector.broadcast %cst_128 : f32 to vector<2x32xf32>
    %353 = arith.addf %352, %351 : vector<2x32xf32>
    %354 = arith.divf %352, %353 : vector<2x32xf32>
    %355 = arith.mulf %346, %283 : vector<2x32xf32>
    %356 = arith.mulf %340, %348 : vector<2x32xf32>
    %357 = arith.addf %355, %356 : vector<2x32xf32>
    %358 = math.tanh %357 : vector<2x32xf32>
    %359 = arith.mulf %354, %358 : vector<2x32xf32>
    %c0_129 = arith.constant 0 : index
    %c0_130 = arith.constant 0 : index
    %360 = vector.load %arg5[%c0_129, %c0_130] : memref<32x128xf32, #tpu.memory_space<vmem>>, vector<32x128xf32>
    %cst_131 = arith.constant dense<0.000000e+00> : vector<2x128xf32>
    %361 = tpu.matmul %359, %360, %cst_131 {dimension_numbers = #tpu.dot_dimension_numbers<[1], [0], [0], [1], [0, 0, 1, 1], [], []>} : vector<2x32xf32>, vector<32x128xf32>, vector<2x128xf32> -> vector<2x128xf32>
    %362 = arith.addf %20, %361 : vector<2x128xf32>
    %c0_132 = arith.constant 0 : index
    %c0_133 = arith.constant 0 : index
    %363 = vector.load %arg6[%c0_132, %c0_133] : memref<32x128xf32, #tpu.memory_space<vmem>>, vector<32x128xf32>
    %cst_134 = arith.constant dense<0.000000e+00> : vector<2x128xf32>
    %364 = tpu.matmul %316, %363, %cst_134 {dimension_numbers = #tpu.dot_dimension_numbers<[1], [0], [0], [1], [0, 0, 1, 1], [], []>} : vector<2x32xf32>, vector<32x128xf32>, vector<2x128xf32> -> vector<2x128xf32>
    %365 = arith.addf %362, %364 : vector<2x128xf32>
    %366 = vector.extract_strided_slice %365 {offsets = [0, 0], sizes = [2, 32], strides = [1, 1]} : vector<2x128xf32> to vector<2x32xf32>
    %367 = arith.negf %366 : vector<2x32xf32>
    %368 = math.exp %367 : vector<2x32xf32>
    %cst_135 = arith.constant 1.000000e+00 : f32
    %369 = vector.broadcast %cst_135 : f32 to vector<2x32xf32>
    %370 = arith.addf %369, %368 : vector<2x32xf32>
    %371 = arith.divf %369, %370 : vector<2x32xf32>
    %372 = vector.extract_strided_slice %365 {offsets = [0, 32], sizes = [2, 32], strides = [1, 1]} : vector<2x128xf32> to vector<2x32xf32>
    %373 = arith.negf %372 : vector<2x32xf32>
    %374 = math.exp %373 : vector<2x32xf32>
    %cst_136 = arith.constant 1.000000e+00 : f32
    %375 = vector.broadcast %cst_136 : f32 to vector<2x32xf32>
    %376 = arith.addf %375, %374 : vector<2x32xf32>
    %377 = arith.divf %375, %376 : vector<2x32xf32>
    %378 = vector.extract_strided_slice %365 {offsets = [0, 64], sizes = [2, 32], strides = [1, 1]} : vector<2x128xf32> to vector<2x32xf32>
    %379 = math.tanh %378 : vector<2x32xf32>
    %380 = vector.extract_strided_slice %365 {offsets = [0, 96], sizes = [2, 32], strides = [1, 1]} : vector<2x128xf32> to vector<2x32xf32>
    %381 = arith.negf %380 : vector<2x32xf32>
    %382 = math.exp %381 : vector<2x32xf32>
    %cst_137 = arith.constant 1.000000e+00 : f32
    %383 = vector.broadcast %cst_137 : f32 to vector<2x32xf32>
    %384 = arith.addf %383, %382 : vector<2x32xf32>
    %385 = arith.divf %383, %384 : vector<2x32xf32>
    %386 = arith.mulf %377, %314 : vector<2x32xf32>
    %387 = arith.mulf %371, %379 : vector<2x32xf32>
    %388 = arith.addf %386, %387 : vector<2x32xf32>
    %389 = math.tanh %388 : vector<2x32xf32>
    %390 = arith.mulf %385, %389 : vector<2x32xf32>
    %391 = vector.extract_strided_slice %390 {offsets = [0, 0], sizes = [1, 32], strides = [1, 1]} : vector<2x32xf32> to vector<1x32xf32>
    %c0_i32_138 = arith.constant 0 : i32
    %392 = arith.addi %c0_i32_138, %c4_i32 : i32
    %393 = arith.index_cast %392 : i32 to index
    %c0_139 = arith.constant 0 : index
    %394 = vector.load %arg14[%393, %c0_139] : memref<16x32xf32, #tpu.memory_space<vmem>>, vector<1x32xf32>
    tpu.vector_store %arg14[%393, %c0_139], %391 {strides = array<i32>} : memref<16x32xf32, #tpu.memory_space<vmem>>, vector<1x32xf32>,
    %395 = vector.extract_strided_slice %390 {offsets = [1, 0], sizes = [1, 32], strides = [1, 1]} : vector<2x32xf32> to vector<1x32xf32>
    %c8_i32_140 = arith.constant 8 : i32
    %396 = arith.addi %c8_i32_140, %c4_i32 : i32
    %397 = arith.index_cast %396 : i32 to index
    %c0_141 = arith.constant 0 : index
    %398 = vector.load %arg14[%397, %c0_141] : memref<16x32xf32, #tpu.memory_space<vmem>>, vector<1x32xf32>
    tpu.vector_store %arg14[%397, %c0_141], %395 {strides = array<i32>} : memref<16x32xf32, #tpu.memory_space<vmem>>, vector<1x32xf32>,
    %c5_i32 = arith.constant 5 : i32
    %c0_i32_142 = arith.constant 0 : i32
    %399 = arith.addi %c0_i32_142, %c5_i32 : i32
    %400 = arith.index_cast %399 : i32 to index
    %c0_143 = arith.constant 0 : index
    %401 = vector.load %arg13[%400, %c0_143] : memref<16x128xf32, #tpu.memory_space<vmem>>, vector<1x128xf32>
    %c8_i32_144 = arith.constant 8 : i32
    %402 = arith.addi %c8_i32_144, %c5_i32 : i32
    %403 = arith.index_cast %402 : i32 to index
    %c0_145 = arith.constant 0 : index
    %404 = vector.load %arg13[%403, %c0_145] : memref<16x128xf32, #tpu.memory_space<vmem>>, vector<1x128xf32>
    %405 = tpu.concatenate %401, %404 in 0 : vector<1x128xf32>, vector<1x128xf32> -> vector<2x128xf32>
    %c0_146 = arith.constant 0 : index
    %c0_147 = arith.constant 0 : index
    %406 = vector.load %arg4[%c0_146, %c0_147] : memref<32x128xf32, #tpu.memory_space<vmem>>, vector<32x128xf32>
    %cst_148 = arith.constant dense<0.000000e+00> : vector<2x128xf32>
    %407 = tpu.matmul %359, %406, %cst_148 {dimension_numbers = #tpu.dot_dimension_numbers<[1], [0], [0], [1], [0, 0, 1, 1], [], []>} : vector<2x32xf32>, vector<32x128xf32>, vector<2x128xf32> -> vector<2x128xf32>
    %408 = arith.addf %405, %407 : vector<2x128xf32>
    %409 = vector.extract_strided_slice %408 {offsets = [0, 0], sizes = [2, 32], strides = [1, 1]} : vector<2x128xf32> to vector<2x32xf32>
    %410 = arith.negf %409 : vector<2x32xf32>
    %411 = math.exp %410 : vector<2x32xf32>
    %cst_149 = arith.constant 1.000000e+00 : f32
    %412 = vector.broadcast %cst_149 : f32 to vector<2x32xf32>
    %413 = arith.addf %412, %411 : vector<2x32xf32>
    %414 = arith.divf %412, %413 : vector<2x32xf32>
    %415 = vector.extract_strided_slice %408 {offsets = [0, 32], sizes = [2, 32], strides = [1, 1]} : vector<2x128xf32> to vector<2x32xf32>
    %416 = arith.negf %415 : vector<2x32xf32>
    %417 = math.exp %416 : vector<2x32xf32>
    %cst_150 = arith.constant 1.000000e+00 : f32
    %418 = vector.broadcast %cst_150 : f32 to vector<2x32xf32>
    %419 = arith.addf %418, %417 : vector<2x32xf32>
    %420 = arith.divf %418, %419 : vector<2x32xf32>
    %421 = vector.extract_strided_slice %408 {offsets = [0, 64], sizes = [2, 32], strides = [1, 1]} : vector<2x128xf32> to vector<2x32xf32>
    %422 = math.tanh %421 : vector<2x32xf32>
    %423 = vector.extract_strided_slice %408 {offsets = [0, 96], sizes = [2, 32], strides = [1, 1]} : vector<2x128xf32> to vector<2x32xf32>
    %424 = arith.negf %423 : vector<2x32xf32>
    %425 = math.exp %424 : vector<2x32xf32>
    %cst_151 = arith.constant 1.000000e+00 : f32
    %426 = vector.broadcast %cst_151 : f32 to vector<2x32xf32>
    %427 = arith.addf %426, %425 : vector<2x32xf32>
    %428 = arith.divf %426, %427 : vector<2x32xf32>
    %429 = arith.mulf %420, %357 : vector<2x32xf32>
    %430 = arith.mulf %414, %422 : vector<2x32xf32>
    %431 = arith.addf %429, %430 : vector<2x32xf32>
    %432 = math.tanh %431 : vector<2x32xf32>
    %433 = arith.mulf %428, %432 : vector<2x32xf32>
    %c0_152 = arith.constant 0 : index
    %c0_153 = arith.constant 0 : index
    %434 = vector.load %arg5[%c0_152, %c0_153] : memref<32x128xf32, #tpu.memory_space<vmem>>, vector<32x128xf32>
    %cst_154 = arith.constant dense<0.000000e+00> : vector<2x128xf32>
    %435 = tpu.matmul %433, %434, %cst_154 {dimension_numbers = #tpu.dot_dimension_numbers<[1], [0], [0], [1], [0, 0, 1, 1], [], []>} : vector<2x32xf32>, vector<32x128xf32>, vector<2x128xf32> -> vector<2x128xf32>
    %436 = arith.addf %20, %435 : vector<2x128xf32>
    %c0_155 = arith.constant 0 : index
    %c0_156 = arith.constant 0 : index
    %437 = vector.load %arg6[%c0_155, %c0_156] : memref<32x128xf32, #tpu.memory_space<vmem>>, vector<32x128xf32>
    %cst_157 = arith.constant dense<0.000000e+00> : vector<2x128xf32>
    %438 = tpu.matmul %390, %437, %cst_157 {dimension_numbers = #tpu.dot_dimension_numbers<[1], [0], [0], [1], [0, 0, 1, 1], [], []>} : vector<2x32xf32>, vector<32x128xf32>, vector<2x128xf32> -> vector<2x128xf32>
    %439 = arith.addf %436, %438 : vector<2x128xf32>
    %440 = vector.extract_strided_slice %439 {offsets = [0, 0], sizes = [2, 32], strides = [1, 1]} : vector<2x128xf32> to vector<2x32xf32>
    %441 = arith.negf %440 : vector<2x32xf32>
    %442 = math.exp %441 : vector<2x32xf32>
    %cst_158 = arith.constant 1.000000e+00 : f32
    %443 = vector.broadcast %cst_158 : f32 to vector<2x32xf32>
    %444 = arith.addf %443, %442 : vector<2x32xf32>
    %445 = arith.divf %443, %444 : vector<2x32xf32>
    %446 = vector.extract_strided_slice %439 {offsets = [0, 32], sizes = [2, 32], strides = [1, 1]} : vector<2x128xf32> to vector<2x32xf32>
    %447 = arith.negf %446 : vector<2x32xf32>
    %448 = math.exp %447 : vector<2x32xf32>
    %cst_159 = arith.constant 1.000000e+00 : f32
    %449 = vector.broadcast %cst_159 : f32 to vector<2x32xf32>
    %450 = arith.addf %449, %448 : vector<2x32xf32>
    %451 = arith.divf %449, %450 : vector<2x32xf32>
    %452 = vector.extract_strided_slice %439 {offsets = [0, 64], sizes = [2, 32], strides = [1, 1]} : vector<2x128xf32> to vector<2x32xf32>
    %453 = math.tanh %452 : vector<2x32xf32>
    %454 = vector.extract_strided_slice %439 {offsets = [0, 96], sizes = [2, 32], strides = [1, 1]} : vector<2x128xf32> to vector<2x32xf32>
    %455 = arith.negf %454 : vector<2x32xf32>
    %456 = math.exp %455 : vector<2x32xf32>
    %cst_160 = arith.constant 1.000000e+00 : f32
    %457 = vector.broadcast %cst_160 : f32 to vector<2x32xf32>
    %458 = arith.addf %457, %456 : vector<2x32xf32>
    %459 = arith.divf %457, %458 : vector<2x32xf32>
    %460 = arith.mulf %451, %388 : vector<2x32xf32>
    %461 = arith.mulf %445, %453 : vector<2x32xf32>
    %462 = arith.addf %460, %461 : vector<2x32xf32>
    %463 = math.tanh %462 : vector<2x32xf32>
    %464 = arith.mulf %459, %463 : vector<2x32xf32>
    %465 = vector.extract_strided_slice %464 {offsets = [0, 0], sizes = [1, 32], strides = [1, 1]} : vector<2x32xf32> to vector<1x32xf32>
    %c0_i32_161 = arith.constant 0 : i32
    %466 = arith.addi %c0_i32_161, %c5_i32 : i32
    %467 = arith.index_cast %466 : i32 to index
    %c0_162 = arith.constant 0 : index
    %468 = vector.load %arg14[%467, %c0_162] : memref<16x32xf32, #tpu.memory_space<vmem>>, vector<1x32xf32>
    tpu.vector_store %arg14[%467, %c0_162], %465 {strides = array<i32>} : memref<16x32xf32, #tpu.memory_space<vmem>>, vector<1x32xf32>,
    %469 = vector.extract_strided_slice %464 {offsets = [1, 0], sizes = [1, 32], strides = [1, 1]} : vector<2x32xf32> to vector<1x32xf32>
    %c8_i32_163 = arith.constant 8 : i32
    %470 = arith.addi %c8_i32_163, %c5_i32 : i32
    %471 = arith.index_cast %470 : i32 to index
    %c0_164 = arith.constant 0 : index
    %472 = vector.load %arg14[%471, %c0_164] : memref<16x32xf32, #tpu.memory_space<vmem>>, vector<1x32xf32>
    tpu.vector_store %arg14[%471, %c0_164], %469 {strides = array<i32>} : memref<16x32xf32, #tpu.memory_space<vmem>>, vector<1x32xf32>,
    %c6_i32 = arith.constant 6 : i32
    %c0_i32_165 = arith.constant 0 : i32
    %473 = arith.addi %c0_i32_165, %c6_i32 : i32
    %474 = arith.index_cast %473 : i32 to index
    %c0_166 = arith.constant 0 : index
    %475 = vector.load %arg13[%474, %c0_166] : memref<16x128xf32, #tpu.memory_space<vmem>>, vector<1x128xf32>
    %c8_i32_167 = arith.constant 8 : i32
    %476 = arith.addi %c8_i32_167, %c6_i32 : i32
    %477 = arith.index_cast %476 : i32 to index
    %c0_168 = arith.constant 0 : index
    %478 = vector.load %arg13[%477, %c0_168] : memref<16x128xf32, #tpu.memory_space<vmem>>, vector<1x128xf32>
    %479 = tpu.concatenate %475, %478 in 0 : vector<1x128xf32>, vector<1x128xf32> -> vector<2x128xf32>
    %c0_169 = arith.constant 0 : index
    %c0_170 = arith.constant 0 : index
    %480 = vector.load %arg4[%c0_169, %c0_170] : memref<32x128xf32, #tpu.memory_space<vmem>>, vector<32x128xf32>
    %cst_171 = arith.constant dense<0.000000e+00> : vector<2x128xf32>
    %481 = tpu.matmul %433, %480, %cst_171 {dimension_numbers = #tpu.dot_dimension_numbers<[1], [0], [0], [1], [0, 0, 1, 1], [], []>} : vector<2x32xf32>, vector<32x128xf32>, vector<2x128xf32> -> vector<2x128xf32>
    %482 = arith.addf %479, %481 : vector<2x128xf32>
    %483 = vector.extract_strided_slice %482 {offsets = [0, 0], sizes = [2, 32], strides = [1, 1]} : vector<2x128xf32> to vector<2x32xf32>
    %484 = arith.negf %483 : vector<2x32xf32>
    %485 = math.exp %484 : vector<2x32xf32>
    %cst_172 = arith.constant 1.000000e+00 : f32
    %486 = vector.broadcast %cst_172 : f32 to vector<2x32xf32>
    %487 = arith.addf %486, %485 : vector<2x32xf32>
    %488 = arith.divf %486, %487 : vector<2x32xf32>
    %489 = vector.extract_strided_slice %482 {offsets = [0, 32], sizes = [2, 32], strides = [1, 1]} : vector<2x128xf32> to vector<2x32xf32>
    %490 = arith.negf %489 : vector<2x32xf32>
    %491 = math.exp %490 : vector<2x32xf32>
    %cst_173 = arith.constant 1.000000e+00 : f32
    %492 = vector.broadcast %cst_173 : f32 to vector<2x32xf32>
    %493 = arith.addf %492, %491 : vector<2x32xf32>
    %494 = arith.divf %492, %493 : vector<2x32xf32>
    %495 = vector.extract_strided_slice %482 {offsets = [0, 64], sizes = [2, 32], strides = [1, 1]} : vector<2x128xf32> to vector<2x32xf32>
    %496 = math.tanh %495 : vector<2x32xf32>
    %497 = vector.extract_strided_slice %482 {offsets = [0, 96], sizes = [2, 32], strides = [1, 1]} : vector<2x128xf32> to vector<2x32xf32>
    %498 = arith.negf %497 : vector<2x32xf32>
    %499 = math.exp %498 : vector<2x32xf32>
    %cst_174 = arith.constant 1.000000e+00 : f32
    %500 = vector.broadcast %cst_174 : f32 to vector<2x32xf32>
    %501 = arith.addf %500, %499 : vector<2x32xf32>
    %502 = arith.divf %500, %501 : vector<2x32xf32>
    %503 = arith.mulf %494, %431 : vector<2x32xf32>
    %504 = arith.mulf %488, %496 : vector<2x32xf32>
    %505 = arith.addf %503, %504 : vector<2x32xf32>
    %506 = math.tanh %505 : vector<2x32xf32>
    %507 = arith.mulf %502, %506 : vector<2x32xf32>
    %c0_175 = arith.constant 0 : index
    %c0_176 = arith.constant 0 : index
    %508 = vector.load %arg5[%c0_175, %c0_176] : memref<32x128xf32, #tpu.memory_space<vmem>>, vector<32x128xf32>
    %cst_177 = arith.constant dense<0.000000e+00> : vector<2x128xf32>
    %509 = tpu.matmul %507, %508, %cst_177 {dimension_numbers = #tpu.dot_dimension_numbers<[1], [0], [0], [1], [0, 0, 1, 1], [], []>} : vector<2x32xf32>, vector<32x128xf32>, vector<2x128xf32> -> vector<2x128xf32>
    %510 = arith.addf %20, %509 : vector<2x128xf32>
    %c0_178 = arith.constant 0 : index
    %c0_179 = arith.constant 0 : index
    %511 = vector.load %arg6[%c0_178, %c0_179] : memref<32x128xf32, #tpu.memory_space<vmem>>, vector<32x128xf32>
    %cst_180 = arith.constant dense<0.000000e+00> : vector<2x128xf32>
    %512 = tpu.matmul %464, %511, %cst_180 {dimension_numbers = #tpu.dot_dimension_numbers<[1], [0], [0], [1], [0, 0, 1, 1], [], []>} : vector<2x32xf32>, vector<32x128xf32>, vector<2x128xf32> -> vector<2x128xf32>
    %513 = arith.addf %510, %512 : vector<2x128xf32>
    %514 = vector.extract_strided_slice %513 {offsets = [0, 0], sizes = [2, 32], strides = [1, 1]} : vector<2x128xf32> to vector<2x32xf32>
    %515 = arith.negf %514 : vector<2x32xf32>
    %516 = math.exp %515 : vector<2x32xf32>
    %cst_181 = arith.constant 1.000000e+00 : f32
    %517 = vector.broadcast %cst_181 : f32 to vector<2x32xf32>
    %518 = arith.addf %517, %516 : vector<2x32xf32>
    %519 = arith.divf %517, %518 : vector<2x32xf32>
    %520 = vector.extract_strided_slice %513 {offsets = [0, 32], sizes = [2, 32], strides = [1, 1]} : vector<2x128xf32> to vector<2x32xf32>
    %521 = arith.negf %520 : vector<2x32xf32>
    %522 = math.exp %521 : vector<2x32xf32>
    %cst_182 = arith.constant 1.000000e+00 : f32
    %523 = vector.broadcast %cst_182 : f32 to vector<2x32xf32>
    %524 = arith.addf %523, %522 : vector<2x32xf32>
    %525 = arith.divf %523, %524 : vector<2x32xf32>
    %526 = vector.extract_strided_slice %513 {offsets = [0, 64], sizes = [2, 32], strides = [1, 1]} : vector<2x128xf32> to vector<2x32xf32>
    %527 = math.tanh %526 : vector<2x32xf32>
    %528 = vector.extract_strided_slice %513 {offsets = [0, 96], sizes = [2, 32], strides = [1, 1]} : vector<2x128xf32> to vector<2x32xf32>
    %529 = arith.negf %528 : vector<2x32xf32>
    %530 = math.exp %529 : vector<2x32xf32>
    %cst_183 = arith.constant 1.000000e+00 : f32
    %531 = vector.broadcast %cst_183 : f32 to vector<2x32xf32>
    %532 = arith.addf %531, %530 : vector<2x32xf32>
    %533 = arith.divf %531, %532 : vector<2x32xf32>
    %534 = arith.mulf %525, %462 : vector<2x32xf32>
    %535 = arith.mulf %519, %527 : vector<2x32xf32>
    %536 = arith.addf %534, %535 : vector<2x32xf32>
    %537 = math.tanh %536 : vector<2x32xf32>
    %538 = arith.mulf %533, %537 : vector<2x32xf32>
    %539 = vector.extract_strided_slice %538 {offsets = [0, 0], sizes = [1, 32], strides = [1, 1]} : vector<2x32xf32> to vector<1x32xf32>
    %c0_i32_184 = arith.constant 0 : i32
    %540 = arith.addi %c0_i32_184, %c6_i32 : i32
    %541 = arith.index_cast %540 : i32 to index
    %c0_185 = arith.constant 0 : index
    %542 = vector.load %arg14[%541, %c0_185] : memref<16x32xf32, #tpu.memory_space<vmem>>, vector<1x32xf32>
    tpu.vector_store %arg14[%541, %c0_185], %539 {strides = array<i32>} : memref<16x32xf32, #tpu.memory_space<vmem>>, vector<1x32xf32>,
    %543 = vector.extract_strided_slice %538 {offsets = [1, 0], sizes = [1, 32], strides = [1, 1]} : vector<2x32xf32> to vector<1x32xf32>
    %c8_i32_186 = arith.constant 8 : i32
    %544 = arith.addi %c8_i32_186, %c6_i32 : i32
    %545 = arith.index_cast %544 : i32 to index
    %c0_187 = arith.constant 0 : index
    %546 = vector.load %arg14[%545, %c0_187] : memref<16x32xf32, #tpu.memory_space<vmem>>, vector<1x32xf32>
    tpu.vector_store %arg14[%545, %c0_187], %543 {strides = array<i32>} : memref<16x32xf32, #tpu.memory_space<vmem>>, vector<1x32xf32>,
    %c7_i32 = arith.constant 7 : i32
    %c0_i32_188 = arith.constant 0 : i32
    %547 = arith.addi %c0_i32_188, %c7_i32 : i32
    %548 = arith.index_cast %547 : i32 to index
    %c0_189 = arith.constant 0 : index
    %549 = vector.load %arg13[%548, %c0_189] : memref<16x128xf32, #tpu.memory_space<vmem>>, vector<1x128xf32>
    %c8_i32_190 = arith.constant 8 : i32
    %550 = arith.addi %c8_i32_190, %c7_i32 : i32
    %551 = arith.index_cast %550 : i32 to index
    %c0_191 = arith.constant 0 : index
    %552 = vector.load %arg13[%551, %c0_191] : memref<16x128xf32, #tpu.memory_space<vmem>>, vector<1x128xf32>
    %553 = tpu.concatenate %549, %552 in 0 : vector<1x128xf32>, vector<1x128xf32> -> vector<2x128xf32>
    %c0_192 = arith.constant 0 : index
    %c0_193 = arith.constant 0 : index
    %554 = vector.load %arg4[%c0_192, %c0_193] : memref<32x128xf32, #tpu.memory_space<vmem>>, vector<32x128xf32>
    %cst_194 = arith.constant dense<0.000000e+00> : vector<2x128xf32>
    %555 = tpu.matmul %507, %554, %cst_194 {dimension_numbers = #tpu.dot_dimension_numbers<[1], [0], [0], [1], [0, 0, 1, 1], [], []>} : vector<2x32xf32>, vector<32x128xf32>, vector<2x128xf32> -> vector<2x128xf32>
    %556 = arith.addf %553, %555 : vector<2x128xf32>
    %557 = vector.extract_strided_slice %556 {offsets = [0, 0], sizes = [2, 32], strides = [1, 1]} : vector<2x128xf32> to vector<2x32xf32>
    %558 = arith.negf %557 : vector<2x32xf32>
    %559 = math.exp %558 : vector<2x32xf32>
    %cst_195 = arith.constant 1.000000e+00 : f32
    %560 = vector.broadcast %cst_195 : f32 to vector<2x32xf32>
    %561 = arith.addf %560, %559 : vector<2x32xf32>
    %562 = arith.divf %560, %561 : vector<2x32xf32>
    %563 = vector.extract_strided_slice %556 {offsets = [0, 32], sizes = [2, 32], strides = [1, 1]} : vector<2x128xf32> to vector<2x32xf32>
    %564 = arith.negf %563 : vector<2x32xf32>
    %565 = math.exp %564 : vector<2x32xf32>
    %cst_196 = arith.constant 1.000000e+00 : f32
    %566 = vector.broadcast %cst_196 : f32 to vector<2x32xf32>
    %567 = arith.addf %566, %565 : vector<2x32xf32>
    %568 = arith.divf %566, %567 : vector<2x32xf32>
    %569 = vector.extract_strided_slice %556 {offsets = [0, 64], sizes = [2, 32], strides = [1, 1]} : vector<2x128xf32> to vector<2x32xf32>
    %570 = math.tanh %569 : vector<2x32xf32>
    %571 = vector.extract_strided_slice %556 {offsets = [0, 96], sizes = [2, 32], strides = [1, 1]} : vector<2x128xf32> to vector<2x32xf32>
    %572 = arith.negf %571 : vector<2x32xf32>
    %573 = math.exp %572 : vector<2x32xf32>
    %cst_197 = arith.constant 1.000000e+00 : f32
    %574 = vector.broadcast %cst_197 : f32 to vector<2x32xf32>
    %575 = arith.addf %574, %573 : vector<2x32xf32>
    %576 = arith.divf %574, %575 : vector<2x32xf32>
    %577 = arith.mulf %568, %505 : vector<2x32xf32>
    %578 = arith.mulf %562, %570 : vector<2x32xf32>
    %579 = arith.addf %577, %578 : vector<2x32xf32>
    %580 = math.tanh %579 : vector<2x32xf32>
    %581 = arith.mulf %576, %580 : vector<2x32xf32>
    %c0_198 = arith.constant 0 : index
    %c0_199 = arith.constant 0 : index
    %582 = vector.load %arg5[%c0_198, %c0_199] : memref<32x128xf32, #tpu.memory_space<vmem>>, vector<32x128xf32>
    %cst_200 = arith.constant dense<0.000000e+00> : vector<2x128xf32>
    %583 = tpu.matmul %581, %582, %cst_200 {dimension_numbers = #tpu.dot_dimension_numbers<[1], [0], [0], [1], [0, 0, 1, 1], [], []>} : vector<2x32xf32>, vector<32x128xf32>, vector<2x128xf32> -> vector<2x128xf32>
    %584 = arith.addf %20, %583 : vector<2x128xf32>
    %c0_201 = arith.constant 0 : index
    %c0_202 = arith.constant 0 : index
    %585 = vector.load %arg6[%c0_201, %c0_202] : memref<32x128xf32, #tpu.memory_space<vmem>>, vector<32x128xf32>
    %cst_203 = arith.constant dense<0.000000e+00> : vector<2x128xf32>
    %586 = tpu.matmul %538, %585, %cst_203 {dimension_numbers = #tpu.dot_dimension_numbers<[1], [0], [0], [1], [0, 0, 1, 1], [], []>} : vector<2x32xf32>, vector<32x128xf32>, vector<2x128xf32> -> vector<2x128xf32>
    %587 = arith.addf %584, %586 : vector<2x128xf32>
    %588 = vector.extract_strided_slice %587 {offsets = [0, 0], sizes = [2, 32], strides = [1, 1]} : vector<2x128xf32> to vector<2x32xf32>
    %589 = arith.negf %588 : vector<2x32xf32>
    %590 = math.exp %589 : vector<2x32xf32>
    %cst_204 = arith.constant 1.000000e+00 : f32
    %591 = vector.broadcast %cst_204 : f32 to vector<2x32xf32>
    %592 = arith.addf %591, %590 : vector<2x32xf32>
    %593 = arith.divf %591, %592 : vector<2x32xf32>
    %594 = vector.extract_strided_slice %587 {offsets = [0, 32], sizes = [2, 32], strides = [1, 1]} : vector<2x128xf32> to vector<2x32xf32>
    %595 = arith.negf %594 : vector<2x32xf32>
    %596 = math.exp %595 : vector<2x32xf32>
    %cst_205 = arith.constant 1.000000e+00 : f32
    %597 = vector.broadcast %cst_205 : f32 to vector<2x32xf32>
    %598 = arith.addf %597, %596 : vector<2x32xf32>
    %599 = arith.divf %597, %598 : vector<2x32xf32>
    %600 = vector.extract_strided_slice %587 {offsets = [0, 64], sizes = [2, 32], strides = [1, 1]} : vector<2x128xf32> to vector<2x32xf32>
    %601 = math.tanh %600 : vector<2x32xf32>
    %602 = vector.extract_strided_slice %587 {offsets = [0, 96], sizes = [2, 32], strides = [1, 1]} : vector<2x128xf32> to vector<2x32xf32>
    %603 = arith.negf %602 : vector<2x32xf32>
    %604 = math.exp %603 : vector<2x32xf32>
    %cst_206 = arith.constant 1.000000e+00 : f32
    %605 = vector.broadcast %cst_206 : f32 to vector<2x32xf32>
    %606 = arith.addf %605, %604 : vector<2x32xf32>
    %607 = arith.divf %605, %606 : vector<2x32xf32>
    %608 = arith.mulf %599, %536 : vector<2x32xf32>
    %609 = arith.mulf %593, %601 : vector<2x32xf32>
    %610 = arith.addf %608, %609 : vector<2x32xf32>
    %611 = math.tanh %610 : vector<2x32xf32>
    %612 = arith.mulf %607, %611 : vector<2x32xf32>
    %613 = vector.extract_strided_slice %612 {offsets = [0, 0], sizes = [1, 32], strides = [1, 1]} : vector<2x32xf32> to vector<1x32xf32>
    %c0_i32_207 = arith.constant 0 : i32
    %614 = arith.addi %c0_i32_207, %c7_i32 : i32
    %615 = arith.index_cast %614 : i32 to index
    %c0_208 = arith.constant 0 : index
    %616 = vector.load %arg14[%615, %c0_208] : memref<16x32xf32, #tpu.memory_space<vmem>>, vector<1x32xf32>
    tpu.vector_store %arg14[%615, %c0_208], %613 {strides = array<i32>} : memref<16x32xf32, #tpu.memory_space<vmem>>, vector<1x32xf32>,
    %617 = vector.extract_strided_slice %612 {offsets = [1, 0], sizes = [1, 32], strides = [1, 1]} : vector<2x32xf32> to vector<1x32xf32>
    %c8_i32_209 = arith.constant 8 : i32
    %618 = arith.addi %c8_i32_209, %c7_i32 : i32
    %619 = arith.index_cast %618 : i32 to index
    %c0_210 = arith.constant 0 : index
    %620 = vector.load %arg14[%619, %c0_210] : memref<16x32xf32, #tpu.memory_space<vmem>>, vector<1x32xf32>
    tpu.vector_store %arg14[%619, %c0_210], %617 {strides = array<i32>} : memref<16x32xf32, #tpu.memory_space<vmem>>, vector<1x32xf32>,
    %c8_i32_211 = arith.constant 8 : i32
    %c0_212 = arith.constant 0 : index
    %c0_213 = arith.constant 0 : index
    %c0_214 = arith.constant 0 : index
    %621 = vector.load %arg12[%c0_212, %c0_213, %c0_214] : memref<4x2x32xf32, #tpu.memory_space<vmem>>, vector<1x2x32xf32>
    %622 = vector.shape_cast %621 : vector<1x2x32xf32> to vector<2x32xf32>
    %623 = vector.shape_cast %581 : vector<2x32xf32> to vector<1x2x32xf32>
    tpu.vector_store %arg12[%c0_212, %c0_213, %c0_214], %623 {strides = array<i32>} : memref<4x2x32xf32, #tpu.memory_space<vmem>>, vector<1x2x32xf32>,
    %c1_215 = arith.constant 1 : index
    %c0_216 = arith.constant 0 : index
    %c0_217 = arith.constant 0 : index
    %624 = vector.load %arg12[%c1_215, %c0_216, %c0_217] : memref<4x2x32xf32, #tpu.memory_space<vmem>>, vector<1x2x32xf32>
    %625 = vector.shape_cast %624 : vector<1x2x32xf32> to vector<2x32xf32>
    %626 = vector.shape_cast %579 : vector<2x32xf32> to vector<1x2x32xf32>
    tpu.vector_store %arg12[%c1_215, %c0_216, %c0_217], %626 {strides = array<i32>} : memref<4x2x32xf32, #tpu.memory_space<vmem>>, vector<1x2x32xf32>,
    %c2_218 = arith.constant 2 : index
    %c0_219 = arith.constant 0 : index
    %c0_220 = arith.constant 0 : index
    %627 = vector.load %arg12[%c2_218, %c0_219, %c0_220] : memref<4x2x32xf32, #tpu.memory_space<vmem>>, vector<1x2x32xf32>
    %628 = vector.shape_cast %627 : vector<1x2x32xf32> to vector<2x32xf32>
    %629 = vector.shape_cast %612 : vector<2x32xf32> to vector<1x2x32xf32>
    tpu.vector_store %arg12[%c2_218, %c0_219, %c0_220], %629 {strides = array<i32>} : memref<4x2x32xf32, #tpu.memory_space<vmem>>, vector<1x2x32xf32>,
    %c3_221 = arith.constant 3 : index
    %c0_222 = arith.constant 0 : index
    %c0_223 = arith.constant 0 : index
    %630 = vector.load %arg12[%c3_221, %c0_222, %c0_223] : memref<4x2x32xf32, #tpu.memory_space<vmem>>, vector<1x2x32xf32>
    %631 = vector.shape_cast %630 : vector<1x2x32xf32> to vector<2x32xf32>
    %632 = vector.shape_cast %610 : vector<2x32xf32> to vector<1x2x32xf32>
    tpu.vector_store %arg12[%c3_221, %c0_222, %c0_223], %632 {strides = array<i32>} : memref<4x2x32xf32, #tpu.memory_space<vmem>>, vector<1x2x32xf32>,
    %c0_224 = arith.constant 0 : index
    %c0_225 = arith.constant 0 : index
    %633 = vector.load %arg9[%c0_224, %c0_225] : memref<1x32xf32, #tpu.memory_space<vmem>>, vector<1x32xf32>
    %c0_226 = arith.constant 0 : index
    %c0_227 = arith.constant 0 : index
    %634 = vector.load %arg10[%c0_226, %c0_227] : memref<1x1xf32, #tpu.memory_space<vmem>>, vector<1x1xf32>
    %c0_228 = arith.constant 0 : index
    %c0_229 = arith.constant 0 : index
    %635 = vector.load %arg14[%c0_228, %c0_229] : memref<16x32xf32, #tpu.memory_space<vmem>>, vector<8x32xf32>
    %cst_230 = arith.constant dense<0.000000e+00> : vector<1x8xf32>
    %636 = tpu.matmul %633, %635, %cst_230 {dimension_numbers = #tpu.dot_dimension_numbers<[1], [1], [0], [0], [0, 0, 1, 0], [], []>} : vector<1x32xf32>, vector<8x32xf32>, vector<1x8xf32> -> vector<1x8xf32>
    %637 = vector.broadcast %634 : vector<1x1xf32> to vector<1x8xf32>
    %638 = arith.addf %636, %637 : vector<1x8xf32>
    %c0_231 = arith.constant 0 : index
    %c0_232 = arith.constant 0 : index
    %c0_233 = arith.constant 0 : index
    %639 = vector.load %arg11[%c0_231, %c0_232, %c0_233] : memref<2x1x8xf32, #tpu.memory_space<vmem>>, vector<1x1x8xf32>
    %640 = vector.shape_cast %639 : vector<1x1x8xf32> to vector<1x8xf32>
    %641 = vector.shape_cast %638 : vector<1x8xf32> to vector<1x1x8xf32>
    tpu.vector_store %arg11[%c0_231, %c0_232, %c0_233], %641 {strides = array<i32>} : memref<2x1x8xf32, #tpu.memory_space<vmem>>, vector<1x1x8xf32>,
    %c8_234 = arith.constant 8 : index
    %c0_235 = arith.constant 0 : index
    %642 = vector.load %arg14[%c8_234, %c0_235] : memref<16x32xf32, #tpu.memory_space<vmem>>, vector<8x32xf32>
    %cst_236 = arith.constant dense<0.000000e+00> : vector<1x8xf32>
    %643 = tpu.matmul %633, %642, %cst_236 {dimension_numbers = #tpu.dot_dimension_numbers<[1], [1], [0], [0], [0, 0, 1, 0], [], []>} : vector<1x32xf32>, vector<8x32xf32>, vector<1x8xf32> -> vector<1x8xf32>
    %644 = vector.broadcast %634 : vector<1x1xf32> to vector<1x8xf32>
    %645 = arith.addf %643, %644 : vector<1x8xf32>
    %c1_237 = arith.constant 1 : index
    %c0_238 = arith.constant 0 : index
    %c0_239 = arith.constant 0 : index
    %646 = vector.load %arg11[%c1_237, %c0_238, %c0_239] : memref<2x1x8xf32, #tpu.memory_space<vmem>>, vector<1x1x8xf32>
    %647 = vector.shape_cast %646 : vector<1x1x8xf32> to vector<1x8xf32>
    %648 = vector.shape_cast %645 : vector<1x8xf32> to vector<1x1x8xf32>
    tpu.vector_store %arg11[%c1_237, %c0_238, %c0_239], %648 {strides = array<i32>} : memref<2x1x8xf32, #tpu.memory_space<vmem>>, vector<1x1x8xf32>,
    return
  }
  func.func @transform_0(%arg0: i32, %arg1: i32) -> (i32, i32, i32) {
    %c0_i32 = arith.constant 0 : i32
    %c0_i32_0 = arith.constant 0 : i32
    return %arg0, %arg1, %c0_i32 : i32, i32, i32
  }
  func.func @transform_1(%arg0: i32, %arg1: i32) -> (i32, i32) {
    %c0_i32 = arith.constant 0 : i32
    %c0_i32_0 = arith.constant 0 : i32
    %c0_i32_1 = arith.constant 0 : i32
    return %c0_i32, %c0_i32_0 : i32, i32
  }
  func.func @transform_2(%arg0: i32, %arg1: i32) -> (i32, i32) {
    %c0_i32 = arith.constant 0 : i32
    %c0_i32_0 = arith.constant 0 : i32
    %c0_i32_1 = arith.constant 0 : i32
    return %c0_i32, %c0_i32_0 : i32, i32
  }
  func.func @transform_3(%arg0: i32, %arg1: i32) -> (i32, i32) {
    %c0_i32 = arith.constant 0 : i32
    %c0_i32_0 = arith.constant 0 : i32
    %c0_i32_1 = arith.constant 0 : i32
    return %c0_i32, %c0_i32_0 : i32, i32
  }
  func.func @transform_4(%arg0: i32, %arg1: i32) -> (i32, i32) {
    %c0_i32 = arith.constant 0 : i32
    %c0_i32_0 = arith.constant 0 : i32
    %c0_i32_1 = arith.constant 0 : i32
    return %c0_i32, %c0_i32_0 : i32, i32
  }
  func.func @transform_5(%arg0: i32, %arg1: i32) -> (i32, i32) {
    %c0_i32 = arith.constant 0 : i32
    %c0_i32_0 = arith.constant 0 : i32
    %c0_i32_1 = arith.constant 0 : i32
    return %c0_i32, %c0_i32_0 : i32, i32
  }
  func.func @transform_6(%arg0: i32, %arg1: i32) -> (i32, i32) {
    %c0_i32 = arith.constant 0 : i32
    %c0_i32_0 = arith.constant 0 : i32
    %c0_i32_1 = arith.constant 0 : i32
    return %c0_i32, %c0_i32_0 : i32, i32
  }
  func.func @transform_7(%arg0: i32, %arg1: i32) -> (i32, i32) {
    %c0_i32 = arith.constant 0 : i32
    %c0_i32_0 = arith.constant 0 : i32
    %c0_i32_1 = arith.constant 0 : i32
    return %c0_i32, %c0_i32_0 : i32, i32
  }
  func.func @transform_8(%arg0: i32, %arg1: i32) -> (i32, i32) {
    %c0_i32 = arith.constant 0 : i32
    %c0_i32_0 = arith.constant 0 : i32
    %c0_i32_1 = arith.constant 0 : i32
    return %c0_i32, %c0_i32_0 : i32, i32
  }
  func.func @transform_9(%arg0: i32, %arg1: i32) -> (i32, i32, i32) {
    %c0_i32 = arith.constant 0 : i32
    %c0_i32_0 = arith.constant 0 : i32
    return %arg0, %c0_i32, %arg1 : i32, i32, i32
  }
}

</mosaic_0001>

<bundles_post_ra>
// kernel: lstm_classifier_forward.1
= control target key start
LH: loop header
LB: loop body
LE: loop exit
PB: predicated region body
PF: predicated region fallthrough
CT: control target
= control target key end

     0   :  { %s4158_s0 = inlined_call_operand.hbm [shape: f32[2,8,16], index: 0, kind: input, shape index: {}]   ;;  %s4159_s1 = inlined_call_operand.hbm [shape: f32[16,128], index: 1, kind: input, shape index: {}]   ;;  %s4160_s2 = inlined_call_operand.hbm [shape: f32[32,128], index: 2, kind: input, shape index: {}]   ;;  %s4161_s3 = inlined_call_operand.hbm [shape: f32[32,128], index: 3, kind: input, shape index: {}]   ;;  %s4162_s4 = inlined_call_operand.hbm [shape: f32[32,128], index: 4, kind: input, shape index: {}]   ;;  %s4163_s5 = inlined_call_operand.vmem [shape: f32[1,128], index: 5, kind: input, shape index: {}]   ;;  %s4164_s6 = inlined_call_operand.vmem [shape: f32[1,128], index: 6, kind: input, shape index: {}]   ;;  %s4165_s7 = inlined_call_operand.vmem [shape: f32[1,32], index: 7, kind: input, shape index: {}]   ;;  %s4166_s8 = inlined_call_operand.<no memory space> [shape: f32[1,1], index: 8, kind: input, shape index: {}]   ;;  %s4167_s9 = inlined_call_operand.hbm [shape: f32[2,1,8], index: 9, kind: output, shape index: {}]  }
   0x1   :  { %v14_v0 = vstv %s4166_s8 }
   0x2   :  { %15 = vst [vmem:[#allocation5] sm:$0x1] %v14_v0 }
   0x3   :  { %16 = vsyncpa [#allocation7], 0 }
   0x4   :  { %17 = vsyncpa [#allocation10], 0 }
   0x5   :  { %18 = vsyncpa [#allocation13], 0 }
   0x6   :  { %19 = vsyncpa [#allocation8], 0  ;;  %s3580_s11 = smov [#allocation9]   ;;  %s3581_s13 = smov [#allocation12]  }
   0x7   :  { %s37_s12 = sshll.u32 %s3580_s11, 4  ;;  %s61_s14 = sshll.u32 %s3581_s13, 4  ;;  %s38_s12 = int_to_ptr.vmem [resolvable:$true] %s37_s12  ;;  %s62_s14 = int_to_ptr.vmem [resolvable:$true] %s61_s14 }
   0x8   :  { %s3460_s15 = scalar_lea.vmem %s38_s12, 256  ;;  %p3465_p1 = scmp.lt.s32.totalorder %s38_s12, %s38_s12 }
   0x9   :  { %p3461_p0 = scmp.ne.s32.totalorder %s38_s12, %s3460_s15  ;;  %p3466_p2 = scmp.lt.s32.totalorder %s3460_s15, %s3460_s15 }
   0xb   :  { %p3467_p3 = por %p3466_p2, %p3465_p1 }
   0xd   :  { %p3468_p4 = pnand %p3467_p3, %p3461_p0 }
   0xf   :  { %3471 = shalt.err (!%p3468_p4)
}
  0x10   :  { %s3582_s16 = smov 128   ;;  %s3583_s8 = smov 8  }
  0x11   :  { %43 = dma.hbm_to_vmem [thread:$0]  %s4159_s1, 256, %s38_s12, [#allocation10], %s3582_s16, %s3582_s16, %s3583_s8  }
  0x12   :  { %s3480_s19 = scalar_lea.vmem %s62_s14, 512  ;;  %p3485_p6 = scmp.lt.s32.totalorder %s62_s14, %s62_s14 }
  0x13   :  { %p3481_p5 = scmp.ne.s32.totalorder %s62_s14, %s3480_s19  ;;  %p3486_p7 = scmp.lt.s32.totalorder %s3480_s19, %s3480_s19 }
  0x15   :  { %p3487_p8 = por %p3486_p7, %p3485_p6 }
  0x17   :  { %p3488_p9 = pnand %p3487_p8, %p3481_p5 }
  0x19   :  { %3491 = shalt.err (!%p3488_p9)
}
  0x1a   :  { %67 = dma.hbm_to_vmem [thread:$0]  %s4161_s3, 512, %s62_s14, [#allocation13], %s3582_s16, %s3582_s16, %s3583_s8  }
  0x1b   :  { %s3584_s22 = smov [#allocation6]   ;;  %s3585_s24 = smov [#allocation11]  }
  0x1c   :  { %s25_s23 = sshll.u32 %s3584_s22, 4  ;;  %s49_s25 = sshll.u32 %s3585_s24, 4  ;;  %s26_s23 = int_to_ptr.vmem [resolvable:$true] %s25_s23  ;;  %s50_s25 = int_to_ptr.vmem [resolvable:$true] %s49_s25 }
  0x1d   :  { %s3500_s1 = scalar_lea.vmem %s26_s23, 256  ;;  %p3505_p11 = scmp.lt.s32.totalorder %s26_s23, %s26_s23 }
  0x1e   :  { %p3501_p10 = scmp.ne.s32.totalorder %s26_s23, %s3500_s1  ;;  %p3506_p12 = scmp.lt.s32.totalorder %s3500_s1, %s3500_s1 }
  0x20   :  { %p3507_p13 = por %p3506_p12, %p3505_p11 }
  0x22   :  { %p3508_p0 = pnand %p3507_p13, %p3501_p10 }
  0x24   :  { %3511 = shalt.err (!%p3508_p0)
}
  0x25   :  { %31 = dma.hbm_to_vmem [thread:$0]  %s4158_s0, 256, %s26_s23, [#allocation7], %s3582_s16, %s3582_s16, %s3583_s8  }
  0x26   :  { %s3520_s3 = scalar_lea.vmem %s50_s25, 512  ;;  %p3525_p2 = scmp.lt.s32.totalorder %s50_s25, %s50_s25 }
  0x27   :  { %p3521_p1 = scmp.ne.s32.totalorder %s50_s25, %s3520_s3  ;;  %p3526_p3 = scmp.lt.s32.totalorder %s3520_s3, %s3520_s3 }
  0x29   :  { %p3527_p4 = por %p3526_p3, %p3525_p2 }
  0x2b   :  { %p3528_p5 = pnand %p3527_p4, %p3521_p1 }
  0x2d   :  { %3531 = shalt.err (!%p3528_p5)
}
  0x2e   :  { %55 = dma.hbm_to_vmem [thread:$0]  %s4160_s2, 512, %s50_s25, [#allocation10], %s3582_s16, %s3582_s16, %s3583_s8  }
  0x2f   :  { %s3586_s30 = smov [#allocation14]  }
  0x30   :  { %s73_s10 = sshll.u32 %s3586_s30, 4  ;;  %s74_s10 = int_to_ptr.vmem [resolvable:$true] %s73_s10 }
  0x31   :  { %s3540_s11 = scalar_lea.vmem %s74_s10, 512  ;;  %p3545_p7 = scmp.lt.s32.totalorder %s74_s10, %s74_s10 }
  0x32   :  { %p3541_p6 = scmp.ne.s32.totalorder %s74_s10, %s3540_s11  ;;  %p3546_p8 = scmp.lt.s32.totalorder %s3540_s11, %s3540_s11 }
  0x34   :  { %p3547_p9 = por %p3546_p8, %p3545_p7 }
  0x36   :  { %p3548_p10 = pnand %p3547_p9, %p3541_p6 }
  0x38   :  { %3551 = shalt.err (!%p3548_p10)
}
  0x39   :  { %79 = dma.hbm_to_vmem [thread:$0]  %s4162_s4, 512, %s74_s10, [#allocation13], %s3582_s16, %s3582_s16, %s3583_s8  }
  0x3a   :  { %3572 = dma.done.wait [#allocation7], 256  }
  0x3b   :  { %3573 = vsyncadd [#allocation7], 4294967040 }
  0x3c   :  { %3574 = dma.done.wait [#allocation10], 768  }
  0x3d   :  { %3575 = vsyncadd [#allocation10], 4294966528 }
  0x3e   :  { %3576 = dma.done.wait [#allocation13], 1024  }
  0x3f   :  { %3577 = vsyncadd [#allocation13], 4294966272  ;;  %vm107_vm0 = vcmask 254976   ;;  %v3587_v1 = vmov 0.0   ;;  %vm3588_vm1 = vmmov 0   ;;  %v115_v2 = vld [vmem:[#allocation9 + $0x8] sm:$0xff] }
  0x40   :  { %3018 = vmatprep.subr.mxu0 %v3587_v1  ;;  %3025 = vmatprep.subr.mxu1 %v3587_v1  ;;  %108 = vst.msk [vmem:[#allocation2] sm:$0x3] %vm107_vm0, %v3587_v1  ;;  %109 = vst.msk [vmem:[#allocation2 + $0x2] sm:$0x3] %vm107_vm0, %v3587_v1  ;;  %v114_v3 = vld [vmem:[#allocation9] sm:$0xff]  ;;  %v113_v4 = vld [vmem:[#allocation6] sm:$0xff] }
  0x41   :  { %110 = vst.msk [vmem:[#allocation2 + $0x4] sm:$0x3] %vm107_vm0, %v3587_v1  ;;  %111 = vst.msk [vmem:[#allocation2 + $0x6] sm:$0x3] %vm107_vm0, %v3587_v1  ;;  %3022 = vmatprep.mubr.msk.f32.mxu0 %vm3588_vm1, %v3587_v1  ;;  %3029 = vmatprep.mubr.msk.f32.mxu1 %vm3588_vm1, %v3587_v1  ;;  %vm122_vm2 = vcmask 130048   ;;  %v198_v5 = vld [vmem:[#allocation6 + $0x8] sm:$0xff] }
  0x42   :  { %3019 = vmatpush3.msra.mxu0 %v115_v2  ;;  %3026 = vmatpush3.msra.mxu1 %v115_v2  ;;  %v3695_v6 = vld [vmem:[#allocation11 + $0x18] sm:$0xff]  ;;  %v3698_v7 = vld [vmem:[#allocation11 + $0x10] sm:$0xff]  ;;  %v3705_v8 = vld [vmem:[#allocation11 + $0x8] sm:$0xff]  ;;  %vm300_vm3 = vcmask 261120   ;;  %vm294_vm4 = vcmask 1040384   ;;  %s3590_s13 = smov 32  }
  0x43   :  { %3020 = vmatprep.subr.mxu0 %v3587_v1  ;;  %3027 = vmatprep.subr.mxu1 %v3587_v1  ;;  %v3711_v9 = vld [vmem:[#allocation11] sm:$0xff]  ;;  %v2840_v11 = vld [vmem:[%s4163_s5] ss:$0 sm:$0xff]  ;;  %s3589_s5 = smov 64   ;;  %v3730_v37 = vld [vmem:[#allocation12 + $0x18] sm:$0xff]  ;;  %vm593_vm5 = vcmask 253952  }
  0x44   :  { %3021 = vmatpush3.msra.mxu0 %v114_v3  ;;  %3028 = vmatpush3.msra.mxu1 %v114_v3  ;;  %v3732_v38 = vld [vmem:[#allocation12 + $0x10] sm:$0xff]  ;;  %v3734_v39 = vld [vmem:[#allocation14 + $0x18] sm:$0xff]  ;;  %v3741_v41 = vld [vmem:[#allocation12 + $0x8] sm:$0xff]  ;;  %vm595_vm6 = vcmask 254977   ;;  %s3593_s19 = smov [#allocation15]   ;;  %vm2743_vm7 = vcmask 57344  }
  0x45   :  { %3023 = vmatmul.mubr.msk.f32.vlgmr.msra.gmra.mxu0 %vm122_vm2, %v113_v4  ;;  %3030 = vmatmul.mubr.msk.f32.vlgmr.msra.gmra.mxu1 %vm122_vm2, %v198_v5  ;;  %v3738_v40 = vld [vmem:[#allocation14 + $0x10] sm:$0xff]  ;;  %v3744_v42 = vld [vmem:[#allocation14 + $0x8] sm:$0xff]  ;;  %v3749_v43 = vld [vmem:[#allocation12] sm:$0xff]  ;;  %s2826_s20 = sshll.u32 %s3593_s19, 4  ;;  %s2827_s20 = int_to_ptr.vmem [resolvable:$true] %s2826_s20 }
  0x46   :  { %3032 = vmatprep.subr.mxu0 %v3587_v1  ;;  %3040 = vmatprep.mubr.msk.f32.mxu0 %vm3588_vm1, %v3587_v1  ;;  %v3759_v45 = vld [vmem:[#allocation14] sm:$0xff]  ;;  %v3800_v52 = vld [vmem:[%s4164_s6] ss:$0 sm:$0xff]  ;;  %p3557_p12 = scmp.lt.s32.totalorder %s2827_s20, %s2827_s20 }
  0x47   :  { %3033 = vmatpush3.msra.mxu0 %v3695_v6  ;;  %3043 = vmatprep.subr.mxu1 %v3587_v1  ;;  %v282_v10 = vld [vmem:[#allocation2] sm:$0x3]  ;;  %v284_v26 = vld [vmem:[#allocation2 + $0x2] sm:$0x3] }
  0x48   :  { %3034 = vmatprep.subr.mxu0 %v3587_v1  ;;  %3051 = vmatprep.mubr.msk.f32.mxu1 %vm3588_vm1, %v3587_v1  ;;  %v286_v46 = vld [vmem:[#allocation2 + $0x4] sm:$0x3]  ;;  %v288_v2 = vld [vmem:[#allocation2 + $0x6] sm:$0x3] }
  0x49   :  { %3035 = vmatpush3.msra.mxu0 %v3698_v7  ;;  %3044 = vmatpush3.msra.mxu1 %v3730_v37 }
  0x4a   :  { %3036 = vmatprep.subr.mxu0 %v3587_v1  ;;  %3045 = vmatprep.subr.mxu1 %v3587_v1 }
  0x4b   :  { %3037 = vmatpush3.msra.mxu0 %v3705_v8  ;;  %3046 = vmatpush3.msra.mxu1 %v3732_v38 }
  0x4c   :  { %3038 = vmatprep.subr.mxu0 %v3587_v1  ;;  %3047 = vmatprep.subr.mxu1 %v3587_v1 }
  0x4d   :  { %3039 = vmatpush3.msra.mxu0 %v3711_v9  ;;  %3048 = vmatpush3.msra.mxu1 %v3741_v41 }
  0x4e   :  { %3041 = vmatmul.mubr.msk.f32.vlgmr.msra.gmra.mxu0 %vm300_vm3, %v282_v10  ;;  %3054 = vmatprep.subr.mxu0 %v3587_v1 }
  0x4f   :  { %3062 = vmatprep.mubr.msk.f32.mxu0 %vm3588_vm1, %v3587_v1  ;;  %3055 = vmatpush3.msra.mxu0 %v3734_v39 }
  0x50   :  { %3056 = vmatprep.subr.mxu0 %v3587_v1  ;;  %3049 = vmatprep.subr.mxu1 %v3587_v1 }
  0x51   :  { %3057 = vmatpush3.msra.mxu0 %v3738_v40  ;;  %3050 = vmatpush3.msra.mxu1 %v3749_v43 }
  0x52   :  { %3058 = vmatprep.subr.mxu0 %v3587_v1  ;;  %3065 = vmatprep.subr.mxu1 %v3587_v1 }
  0x53   :  { %3059 = vmatpush3.msra.mxu0 %v3744_v42 }
  0x54   :  { %3060 = vmatprep.subr.mxu0 %v3587_v1 }
  0x55   :  { %3061 = vmatpush3.msra.mxu0 %v3759_v45 }
  0x56   :  { %3063 = vmatmul.mubr.msk.f32.vlgmr.msra.gmra.mxu0 %vm300_vm3, %v286_v46  ;;  %3076 = vmatprep.subr.mxu0 %v3587_v1 }
  0x57   :  { %3077 = vmatpush3.msra.mxu0 %v3730_v37  ;;  %3084 = vmatprep.mubr.msk.f32.mxu0 %vm3588_vm1, %v3587_v1 }
  0x58   :  { %3078 = vmatprep.subr.mxu0 %v3587_v1 }
  0x59   :  { %3079 = vmatpush3.msra.mxu0 %v3732_v38 }
  0x5a   :  { %3080 = vmatprep.subr.mxu0 %v3587_v1 }
  0x5b   :  { %3081 = vmatpush3.msra.mxu0 %v3741_v41 }
  0x5c   :  { %3082 = vmatprep.subr.mxu0 %v3587_v1 }
  0x5d   :  { %3083 = vmatpush3.msra.mxu0 %v3749_v43 }
  0x5e   :  { %3098 = vmatprep.subr.mxu0 %v3587_v1 }
 0x105   :  { %v192_v12 = vpop.f32.mrf.mxu0  ;;  %v270_v13 = vpop.f32.mrf.mxu1 }
 0x106   :  { %v193_v14 = vadd.f32 %v2840_v11, %v192_v12  ;;  %v271_v15 = vadd.f32 %v2840_v11, %v270_v13 }
 0x107   :  { %v3024_v16 = vpop.f32.mrf.mxu0  ;;  %v3031_v17 = vpop.f32.mrf.mxu1 }
 0x108   :  { %196 = vst [vmem:[#allocation3] sm:$0xff] %v193_v14  ;;  %274 = vst [vmem:[#allocation3 + $0x8] sm:$0xff] %v271_v15 }
 0x10e   :  { %v370_v18 = vpop.f32.mrf.mxu0 }
 0x10f   :  { %v289_v19 = vld [vmem:[#allocation3] sm:$0x1]  ;;  %v290_v20 = vld [vmem:[#allocation3 + $0x8] sm:$0x1]  ;;  %v598_v55 = vld [vmem:[#allocation3 + $0x9] sm:$0x1] }
 0x110   :  { %v292_v21 = vrot.slane %v290_v20, 7  ;;  %v3042_v22 = vpop.f32.mrf.mxu0  ;;  %v600_v58 = vrot.slane %v598_v55, 7  ;;  %v597_v59 = vld [vmem:[#allocation3 + $0x1] sm:$0x1] }
 0x112   :  { %v295_v23 = vsel %vm294_vm4, %v289_v19, %v292_v21  ;;  %v602_v60 = vsel %vm294_vm4, %v597_v59, %v600_v58 }
 0x113   :  { %v374_v24 = vadd.f32 %v370_v18, %v295_v23 }
 0x115   :  { %3323 = vtanh.f32 %v374_v24  ;;  %v2845_v27 = vmul.f32 -1.442695, %v374_v24 }
 0x116   :  { %v556_v50 = vpop.f32.mrf.mxu0 }
 0x117   :  { %3325 = vpow2.f32 %v2845_v27 }
 0x118   :  { %v3064_v51 = vpop.f32.mrf.mxu0 }
 0x122   :  { %v3324_v25 = vpop.eup %3323 }
 0x123   :  { %388 = vrot.lane.b32.xlu0 %v3324_v25, %s3589_s5 }
 0x124   :  { %v3326_v28 = vpop.eup %3325 }
 0x125   :  { %v378_v29 = vadd.f32 1.0, %v3326_v28 }
 0x127   :  { %383 = vrot.lane.b32.xlu0 %v284_v26, %s3590_s13  ;;  %3327 = vrcp.f32 %v378_v29 }
 0x134   :  { %v3328_v30 = vpop.eup %3327 }
 0x195   :  { %v389_v31 = vpop.permute.xlu0 %388 }
 0x196   :  { %v391_v32 = vmul.f32 %v3328_v30, %v389_v31 }
 0x198   :  { %393 = vrot.lane.b32.xlu1 %v391_v32, %s3590_s13 }
 0x199   :  { %v384_v33 = vpop.permute.xlu0 %383 }
 0x19a   :  { %v386_v34 = vmul.f32 %v3328_v30, %v384_v33 }
 0x20a   :  { %v394_v35 = vpop.permute.xlu1 %393 }
 0x20b   :  { %v3727_v36 = vadd.f32 %v394_v35, %v386_v34 }
 0x20d   :  { %3329 = vtanh.f32 %v3727_v36 }
 0x21a   :  { %v3330_v44 = vpop.eup %3329 }
 0x21b   :  { %399 = vrot.lane.b32.xlu1 %v3330_v44, %s3589_s5 }
 0x28d   :  { %v400_v47 = vpop.permute.xlu1 %399 }
 0x28e   :  { %v402_v48 = vmul.f32 %v3328_v30, %v400_v47 }
 0x290   :  { %408 = vrot.lane.b32.xlu0 %v402_v48, %s3590_s13 }
 0x302   :  { %v409_v49 = vpop.permute.xlu0 %408 }
 0x303   :  { %3052 = vmatmul.mubr.msk.f32.vlgmr.msra.gmra.mxu1 %vm300_vm3, %v409_v49 }
 0x304   :  { %3066 = vmatpush3.msra.mxu1 %v3695_v6  ;;  %3073 = vmatprep.mubr.msk.f32.mxu1 %vm3588_vm1, %v3587_v1 }
 0x305   :  { %3067 = vmatprep.subr.mxu1 %v3587_v1 }
 0x306   :  { %3068 = vmatpush3.msra.mxu1 %v3698_v7 }
 0x307   :  { %3069 = vmatprep.subr.mxu1 %v3587_v1 }
 0x308   :  { %3070 = vmatpush3.msra.mxu1 %v3705_v8 }
 0x309   :  { %3071 = vmatprep.subr.mxu1 %v3587_v1 }
 0x30a   :  { %3072 = vmatpush3.msra.mxu1 %v3711_v9 }
 0x30b   :  { %3074 = vmatmul.mubr.msk.f32.vlgmr.msra.gmra.mxu1 %vm300_vm3, %v409_v49  ;;  %3087 = vmatprep.subr.mxu1 %v3587_v1 }
 0x30c   :  { %3088 = vmatpush3.msra.mxu1 %v3734_v39  ;;  %3095 = vmatprep.mubr.msk.f32.mxu1 %vm3588_vm1, %v3587_v1 }
 0x30d   :  { %3089 = vmatprep.subr.mxu1 %v3587_v1 }
 0x30e   :  { %3090 = vmatpush3.msra.mxu1 %v3738_v40 }
 0x30f   :  { %3091 = vmatprep.subr.mxu1 %v3587_v1 }
 0x310   :  { %3092 = vmatpush3.msra.mxu1 %v3744_v42 }
 0x311   :  { %3093 = vmatprep.subr.mxu1 %v3587_v1 }
 0x312   :  { %3094 = vmatpush3.msra.mxu1 %v3759_v45 }
 0x313   :  { %3109 = vmatprep.subr.mxu1 %v3587_v1 }
 0x3c3   :  { %v478_v53 = vpop.f32.mrf.mxu1 }
 0x3c4   :  { %v482_v54 = vadd.f32 %v3800_v52, %v478_v53 }
 0x3c5   :  { %v3053_v56 = vpop.f32.mrf.mxu1 }
 0x3c6   :  { %v560_v57 = vadd.f32 %v556_v50, %v482_v54  ;;  %v889_v50 = vld [vmem:[#allocation3 + $0x2] sm:$0x1] }
 0x3c8   :  { %3331 = vtanh.f32 %v560_v57  ;;  %v2848_v5 = vmul.f32 -1.442695, %v560_v57 }
 0x3cb   :  { %v673_v61 = vpop.f32.mrf.mxu1 }
 0x3cc   :  { %v677_v62 = vadd.f32 %v673_v61, %v602_v60 }
 0x3cd   :  { %v3075_v63 = vpop.f32.mrf.mxu1 }
 0x3ce   :  { %3333 = vtanh.f32 %v677_v62  ;;  %v2850_v4 = vmul.f32 -1.442695, %v677_v62 }
 0x3d0   :  { %3335 = vpow2.f32 %v2850_v4 }
 0x3d1   :  { %3337 = vpow2.f32 %v2848_v5 }
 0x3d5   :  { %v3332_v0 = vpop.eup %3331 }
 0x3d6   :  { %574 = vrot.lane.b32.xlu0 %v3332_v0, %s3589_s5 }
 0x3da   :  { %569 = vrot.lane.b32.xlu0 %v288_v2, %s3590_s13 }
 0x3db   :  { %v3334_v3 = vpop.eup %3333 }
 0x3dc   :  { %687 = vrot.lane.b32.xlu1 %v3334_v3, %s3589_s5 }
 0x3dd   :  { %v3336_v10 = vpop.eup %3335 }
 0x3de   :  { %v681_v11 = vadd.f32 1.0, %v3336_v10  ;;  %v3338_v12 = vpop.eup %3337 }
 0x3df   :  { %v564_v13 = vadd.f32 1.0, %v3338_v12 }
 0x3e0   :  { %3339 = vrcp.f32 %v681_v11 }
 0x3e1   :  { %3341 = vrcp.f32 %v564_v13 }
 0x3ed   :  { %v3340_v14 = vpop.eup %3339 }
 0x3ee   :  { %v3342_v18 = vpop.eup %3341  ;;  %v685_v20 = vmul.f32 %v3340_v14, %v3727_v36  ;;  %v890_v36 = vld [vmem:[#allocation3 + $0xa] sm:$0x1] }
 0x3ef   :  { %v892_v48 = vrot.slane %v890_v36, 7 }
 0x3f1   :  { %v894_v53 = vsel %vm294_vm4, %v889_v50, %v892_v48 }
 0x448   :  { %v575_v17 = vpop.permute.xlu0 %574 }
 0x449   :  { %v577_v19 = vmul.f32 %v3342_v18, %v575_v17 }
 0x44c   :  { %v570_v21 = vpop.permute.xlu0 %569 }
 0x44d   :  { %v572_v24 = vmul.f32 %v3342_v18, %v570_v21 }
 0x44e   :  { %v688_v15 = vpop.permute.xlu1 %687 }
 0x44f   :  { %v690_v16 = vmul.f32 %v3340_v14, %v688_v15 }
 0x451   :  { %692 = vrot.lane.b32.xlu1 %v690_v16, %s3590_s13 }
 0x455   :  { %579 = vrot.lane.b32.xlu1 %v577_v19, %s3590_s13 }
 0x4c3   :  { %v693_v22 = vpop.permute.xlu1 %692 }
 0x4c4   :  { %v3810_v23 = vadd.f32 %v693_v22, %v685_v20 }
 0x4c6   :  { %3343 = vtanh.f32 %v3810_v23 }
 0x4c7   :  { %v580_v25 = vpop.permute.xlu1 %579 }
 0x4c8   :  { %v3813_v26 = vadd.f32 %v580_v25, %v572_v24 }
 0x4ca   :  { %3345 = vtanh.f32 %v3813_v26 }
 0x4d3   :  { %v3344_v27 = vpop.eup %3343 }
 0x4d4   :  { %698 = vrot.lane.b32.xlu0 %v3344_v27, %s3589_s5 }
 0x4d7   :  { %v3346_v28 = vpop.eup %3345 }
 0x4d8   :  { %585 = vrot.lane.b32.xlu1 %v3346_v28, %s3589_s5 }
 0x546   :  { %v699_v29 = vpop.permute.xlu0 %698 }
 0x547   :  { %v701_v30 = vmul.f32 %v3340_v14, %v699_v29 }
 0x549   :  { %707 = vrot.lane.b32.xlu0 %v701_v30, %s3590_s13  ;;  %v1182_v30 = vld [vmem:[#allocation3 + $0xb] sm:$0x1] }
 0x54a   :  { %v586_v31 = vpop.permute.xlu1 %585 }
 0x54b   :  { %v588_v32 = vmul.f32 %v3342_v18, %v586_v31 }
 0x54d   :  { %590 = vrot.lane.b32.xlu1 %v588_v32, %s3590_s13 }
 0x5bb   :  { %v708_v33 = vpop.permute.xlu0 %707 }
 0x5bc   :  { %3085 = vmatmul.mubr.msk.f32.vlgmr.msra.gmra.mxu0 %vm300_vm3, %v708_v33 }
 0x5bd   :  { %3099 = vmatpush3.msra.mxu0 %v3695_v6  ;;  %3106 = vmatprep.mubr.msk.f32.mxu0 %vm3588_vm1, %v3587_v1 }
 0x5be   :  { %3100 = vmatprep.subr.mxu0 %v3587_v1 }
 0x5bf   :  { %3101 = vmatpush3.msra.mxu0 %v3698_v7  ;;  %v591_v34 = vpop.permute.xlu1 %590 }
 0x5c0   :  { %3102 = vmatprep.subr.mxu0 %v3587_v1  ;;  %594 = vst.msk [vmem:[#allocation4] sm:$0x1] %vm593_vm5, %v591_v34  ;;  %3096 = vmatmul.mubr.msk.f32.vlgmr.msra.gmra.mxu1 %vm300_vm3, %v591_v34 }
 0x5c1   :  { %596 = vst.msk [vmem:[#allocation4 + $0x7] sm:$0x2] %vm595_vm6, %v591_v34  ;;  %3103 = vmatpush3.msra.mxu0 %v3705_v8  ;;  %3110 = vmatpush3.msra.mxu1 %v3730_v37  ;;  %v1181_v34 = vld [vmem:[#allocation3 + $0x3] sm:$0x1] }
 0x5c2   :  { %3104 = vmatprep.subr.mxu0 %v3587_v1  ;;  %3111 = vmatprep.subr.mxu1 %v3587_v1 }
 0x5c3   :  { %3105 = vmatpush3.msra.mxu0 %v3711_v9  ;;  %3112 = vmatpush3.msra.mxu1 %v3732_v38 }
 0x5c4   :  { %3107 = vmatmul.mubr.msk.f32.vlgmr.msra.gmra.mxu0 %vm300_vm3, %v708_v33  ;;  %3120 = vmatprep.subr.mxu0 %v3587_v1  ;;  %v1184_v33 = vrot.slane %v1182_v30, 7 }
 0x5c5   :  { %3121 = vmatpush3.msra.mxu0 %v3734_v39  ;;  %3113 = vmatprep.subr.mxu1 %v3587_v1 }
 0x5c6   :  { %3122 = vmatprep.subr.mxu0 %v3587_v1  ;;  %3114 = vmatpush3.msra.mxu1 %v3741_v41 }
 0x5c7   :  { %3123 = vmatpush3.msra.mxu0 %v3738_v40  ;;  %3128 = vmatprep.mubr.msk.f32.mxu0 %vm3588_vm1, %v3587_v1 }
 0x5c8   :  { %3124 = vmatprep.subr.mxu0 %v3587_v1  ;;  %3115 = vmatprep.subr.mxu1 %v3587_v1 }
 0x5c9   :  { %3125 = vmatpush3.msra.mxu0 %v3744_v42  ;;  %3116 = vmatpush3.msra.mxu1 %v3749_v43 }
 0x5ca   :  { %3126 = vmatprep.subr.mxu0 %v3587_v1  ;;  %3117 = vmatprep.mubr.msk.f32.mxu1 %vm3588_vm1, %v3587_v1 }
 0x5cb   :  { %3127 = vmatpush3.msra.mxu0 %v3759_v45  ;;  %3131 = vmatprep.subr.mxu1 %v3587_v1 }
 0x5cc   :  { %3142 = vmatprep.subr.mxu0 %v3587_v1 }
 0x67c   :  { %v777_v35 = vpop.f32.mrf.mxu0 }
 0x67d   :  { %v781_v46 = vadd.f32 %v3800_v52, %v777_v35  ;;  %v1186_v35 = vsel %vm294_vm4, %v1181_v34, %v1184_v33 }
 0x67e   :  { %v3086_v44 = vpop.f32.mrf.mxu0 }
 0x680   :  { %v854_v47 = vpop.f32.mrf.mxu1 }
 0x681   :  { %v858_v49 = vadd.f32 %v854_v47, %v781_v46 }
 0x682   :  { %v3097_v51 = vpop.f32.mrf.mxu1 }
 0x683   :  { %3347 = vtanh.f32 %v858_v49  ;;  %v2853_v59 = vmul.f32 -1.442695, %v858_v49 }
 0x684   :  { %v965_v54 = vpop.f32.mrf.mxu0 }
 0x685   :  { %v969_v55 = vadd.f32 %v965_v54, %v894_v53 }
 0x686   :  { %v3108_v56 = vpop.f32.mrf.mxu0 }
 0x687   :  { %3349 = vtanh.f32 %v969_v55  ;;  %v2855_v60 = vmul.f32 -1.442695, %v969_v55 }
 0x688   :  { %3351 = vpow2.f32 %v2853_v59 }
 0x689   :  { %3353 = vpow2.f32 %v2855_v60 }
 0x690   :  { %v3348_v57 = vpop.eup %3347 }
 0x691   :  { %868 = vrot.lane.b32.xlu1 %v3348_v57, %s3589_s5 }
 0x694   :  { %v3350_v58 = vpop.eup %3349 }
 0x695   :  { %979 = vrot.lane.b32.xlu0 %v3350_v58, %s3589_s5  ;;  %v3352_v61 = vpop.eup %3351 }
 0x696   :  { %v862_v62 = vadd.f32 1.0, %v3352_v61  ;;  %v3354_v63 = vpop.eup %3353 }
 0x697   :  { %v973_v0 = vadd.f32 1.0, %v3354_v63 }
 0x698   :  { %3355 = vrcp.f32 %v862_v62 }
 0x699   :  { %3357 = vrcp.f32 %v973_v0 }
 0x6a5   :  { %v3356_v2 = vpop.eup %3355 }
 0x6a6   :  { %v3358_v5 = vpop.eup %3357  ;;  %v866_v12 = vmul.f32 %v3356_v2, %v3813_v26 }
 0x6a7   :  { %v977_v15 = vmul.f32 %v3358_v5, %v3810_v23 }
 0x703   :  { %v869_v3 = vpop.permute.xlu1 %868 }
 0x704   :  { %v871_v4 = vmul.f32 %v3356_v2, %v869_v3 }
 0x706   :  { %873 = vrot.lane.b32.xlu1 %v871_v4, %s3590_s13 }
 0x707   :  { %v980_v10 = vpop.permute.xlu0 %979 }
 0x708   :  { %v982_v11 = vmul.f32 %v3358_v5, %v980_v10 }
 0x70a   :  { %984 = vrot.lane.b32.xlu0 %v982_v11, %s3590_s13 }
 0x778   :  { %v874_v13 = vpop.permute.xlu1 %873 }
 0x779   :  { %v3862_v14 = vadd.f32 %v874_v13, %v866_v12 }
 0x77b   :  { %3359 = vtanh.f32 %v3862_v14 }
 0x77c   :  { %v985_v16 = vpop.permute.xlu0 %984 }
 0x77d   :  { %v3866_v17 = vadd.f32 %v985_v16, %v977_v15 }
 0x77f   :  { %3361 = vtanh.f32 %v3866_v17 }
 0x788   :  { %v3360_v18 = vpop.eup %3359 }
 0x789   :  { %879 = vrot.lane.b32.xlu1 %v3360_v18, %s3589_s5 }
 0x78c   :  { %v3362_v19 = vpop.eup %3361 }
 0x78d   :  { %990 = vrot.lane.b32.xlu0 %v3362_v19, %s3589_s5 }
 0x7fb   :  { %v880_v20 = vpop.permute.xlu1 %879 }
 0x7fc   :  { %v882_v21 = vmul.f32 %v3356_v2, %v880_v20 }
 0x7fe   :  { %884 = vrot.lane.b32.xlu1 %v882_v21, %s3590_s13  ;;  %v1474_v21 = vld [vmem:[#allocation3 + $0xc] sm:$0x1] }
 0x7ff   :  { %v991_v22 = vpop.permute.xlu0 %990 }
 0x800   :  { %v993_v24 = vmul.f32 %v3358_v5, %v991_v22 }
 0x802   :  { %999 = vrot.lane.b32.xlu0 %v993_v24, %s3590_s13 }
 0x870   :  { %v885_v23 = vpop.permute.xlu1 %884 }
 0x871   :  { %887 = vst.msk [vmem:[#allocation4 + $0x1] sm:$0x1] %vm593_vm5, %v885_v23  ;;  %3129 = vmatmul.mubr.msk.f32.vlgmr.msra.gmra.mxu0 %vm300_vm3, %v885_v23 }
 0x872   :  { %888 = vst.msk [vmem:[#allocation4 + $0x8] sm:$0x2] %vm595_vm6, %v885_v23  ;;  %3143 = vmatpush3.msra.mxu0 %v3730_v37  ;;  %3150 = vmatprep.mubr.msk.f32.mxu0 %vm3588_vm1, %v3587_v1  ;;  %v1476_v23 = vrot.slane %v1474_v21, 7 }
 0x873   :  { %3144 = vmatprep.subr.mxu0 %v3587_v1 }
 0x874   :  { %v1000_v25 = vpop.permute.xlu0 %999  ;;  %3145 = vmatpush3.msra.mxu0 %v3732_v38 }
 0x875   :  { %3118 = vmatmul.mubr.msk.f32.vlgmr.msra.gmra.mxu1 %vm300_vm3, %v1000_v25  ;;  %3146 = vmatprep.subr.mxu0 %v3587_v1 }
 0x876   :  { %3132 = vmatpush3.msra.mxu1 %v3695_v6  ;;  %3139 = vmatprep.mubr.msk.f32.mxu1 %vm3588_vm1, %v3587_v1 }
 0x877   :  { %3133 = vmatprep.subr.mxu1 %v3587_v1  ;;  %3147 = vmatpush3.msra.mxu0 %v3741_v41 }
 0x878   :  { %3134 = vmatpush3.msra.mxu1 %v3698_v7  ;;  %3148 = vmatprep.subr.mxu0 %v3587_v1 }
 0x879   :  { %3135 = vmatprep.subr.mxu1 %v3587_v1  ;;  %3149 = vmatpush3.msra.mxu0 %v3749_v43 }
 0x87a   :  { %3136 = vmatpush3.msra.mxu1 %v3705_v8  ;;  %3164 = vmatprep.subr.mxu0 %v3587_v1 }
 0x87b   :  { %3137 = vmatprep.subr.mxu1 %v3587_v1 }
 0x87c   :  { %3138 = vmatpush3.msra.mxu1 %v3711_v9 }
 0x87d   :  { %3140 = vmatmul.mubr.msk.f32.vlgmr.msra.gmra.mxu1 %vm300_vm3, %v1000_v25  ;;  %3153 = vmatprep.subr.mxu1 %v3587_v1  ;;  %v1473_v25 = vld [vmem:[#allocation3 + $0x4] sm:$0x1] }
 0x87e   :  { %3154 = vmatpush3.msra.mxu1 %v3734_v39  ;;  %3161 = vmatprep.mubr.msk.f32.mxu1 %vm3588_vm1, %v3587_v1 }
 0x87f   :  { %3155 = vmatprep.subr.mxu1 %v3587_v1 }
 0x880   :  { %3156 = vmatpush3.msra.mxu1 %v3738_v40 }
 0x881   :  { %3157 = vmatprep.subr.mxu1 %v3587_v1 }
 0x882   :  { %3158 = vmatpush3.msra.mxu1 %v3744_v42 }
 0x883   :  { %3159 = vmatprep.subr.mxu1 %v3587_v1 }
 0x884   :  { %3160 = vmatpush3.msra.mxu1 %v3759_v45 }
 0x885   :  { %3175 = vmatprep.subr.mxu1 %v3587_v1 }
 0x931   :  { %v1146_v26 = vpop.f32.mrf.mxu0 }
 0x933   :  { %v3130_v27 = vpop.f32.mrf.mxu0 }
 0x935   :  { %v1069_v28 = vpop.f32.mrf.mxu1 }
 0x936   :  { %v1073_v29 = vadd.f32 %v3800_v52, %v1069_v28 }
 0x937   :  { %v3119_v31 = vpop.f32.mrf.mxu1 }
 0x938   :  { %v1150_v32 = vadd.f32 %v1146_v26, %v1073_v29  ;;  %v1478_v26 = vsel %vm294_vm4, %v1473_v25, %v1476_v23 }
 0x93a   :  { %3363 = vtanh.f32 %v1150_v32  ;;  %v2858_v49 = vmul.f32 -1.442695, %v1150_v32 }
 0x93d   :  { %v1257_v36 = vpop.f32.mrf.mxu1 }
 0x93e   :  { %v1261_v44 = vadd.f32 %v1257_v36, %v1186_v35 }
 0x93f   :  { %v3141_v46 = vpop.f32.mrf.mxu1 }
 0x940   :  { %3365 = vtanh.f32 %v1261_v44  ;;  %v2860_v50 = vmul.f32 -1.442695, %v1261_v44 }
 0x941   :  { %3367 = vpow2.f32 %v2858_v49 }
 0x942   :  { %3369 = vpow2.f32 %v2860_v50 }
 0x947   :  { %v3364_v47 = vpop.eup %3363 }
 0x948   :  { %1160 = vrot.lane.b32.xlu1 %v3364_v47, %s3589_s5 }
 0x94d   :  { %v3366_v48 = vpop.eup %3365 }
 0x94e   :  { %1271 = vrot.lane.b32.xlu0 %v3366_v48, %s3589_s5  ;;  %v3368_v51 = vpop.eup %3367 }
 0x94f   :  { %v1154_v53 = vadd.f32 1.0, %v3368_v51  ;;  %v3370_v54 = vpop.eup %3369 }
 0x950   :  { %v1265_v55 = vadd.f32 1.0, %v3370_v54 }
 0x951   :  { %3371 = vrcp.f32 %v1154_v53 }
 0x952   :  { %3373 = vrcp.f32 %v1265_v55 }
 0x95e   :  { %v3372_v56 = vpop.eup %3371 }
 0x95f   :  { %v3374_v59 = vpop.eup %3373  ;;  %v1158_v62 = vmul.f32 %v3372_v56, %v3862_v14 }
 0x960   :  { %v1269_v2 = vmul.f32 %v3374_v59, %v3866_v17 }
 0x9ba   :  { %v1161_v57 = vpop.permute.xlu1 %1160 }
 0x9bb   :  { %v1163_v58 = vmul.f32 %v3372_v56, %v1161_v57 }
 0x9bd   :  { %1165 = vrot.lane.b32.xlu1 %v1163_v58, %s3590_s13 }
 0x9c0   :  { %v1272_v60 = vpop.permute.xlu0 %1271 }
 0x9c1   :  { %v1274_v61 = vmul.f32 %v3374_v59, %v1272_v60 }
 0x9c3   :  { %1276 = vrot.lane.b32.xlu0 %v1274_v61, %s3590_s13 }
 0xa2f   :  { %v1166_v63 = vpop.permute.xlu1 %1165 }
 0xa30   :  { %v3915_v0 = vadd.f32 %v1166_v63, %v1158_v62 }
 0xa32   :  { %3375 = vtanh.f32 %v3915_v0 }
 0xa35   :  { %v1277_v3 = vpop.permute.xlu0 %1276 }
 0xa36   :  { %v3919_v4 = vadd.f32 %v1277_v3, %v1269_v2 }
 0xa38   :  { %3377 = vtanh.f32 %v3919_v4 }
 0xa3f   :  { %v3376_v5 = vpop.eup %3375 }
 0xa40   :  { %1171 = vrot.lane.b32.xlu1 %v3376_v5, %s3589_s5 }
 0xa45   :  { %v3378_v10 = vpop.eup %3377 }
 0xa46   :  { %1282 = vrot.lane.b32.xlu0 %v3378_v10, %s3589_s5 }
 0xab2   :  { %v1172_v11 = vpop.permute.xlu1 %1171 }
 0xab3   :  { %v1174_v12 = vmul.f32 %v3372_v56, %v1172_v11 }
 0xab5   :  { %1176 = vrot.lane.b32.xlu1 %v1174_v12, %s3590_s13 }
 0xab8   :  { %v1283_v13 = vpop.permute.xlu0 %1282 }
 0xab9   :  { %v1285_v14 = vmul.f32 %v3374_v59, %v1283_v13 }
 0xabb   :  { %1291 = vrot.lane.b32.xlu0 %v1285_v14, %s3590_s13 }
 0xb27   :  { %v1177_v15 = vpop.permute.xlu1 %1176 }
 0xb28   :  { %1179 = vst.msk [vmem:[#allocation4 + $0x2] sm:$0x1] %vm593_vm5, %v1177_v15  ;;  %3162 = vmatmul.mubr.msk.f32.vlgmr.msra.gmra.mxu1 %vm300_vm3, %v1177_v15 }
 0xb29   :  { %1180 = vst.msk [vmem:[#allocation4 + $0x9] sm:$0x2] %vm595_vm6, %v1177_v15  ;;  %3176 = vmatpush3.msra.mxu1 %v3730_v37  ;;  %3183 = vmatprep.mubr.msk.f32.mxu1 %vm3588_vm1, %v3587_v1 }
 0xb2a   :  { %3177 = vmatprep.subr.mxu1 %v3587_v1 }
 0xb2b   :  { %3178 = vmatpush3.msra.mxu1 %v3732_v38 }
 0xb2c   :  { %3179 = vmatprep.subr.mxu1 %v3587_v1 }
 0xb2d   :  { %v1292_v16 = vpop.permute.xlu0 %1291  ;;  %3180 = vmatpush3.msra.mxu1 %v3741_v41 }
 0xb2e   :  { %3151 = vmatmul.mubr.msk.f32.vlgmr.msra.gmra.mxu0 %vm300_vm3, %v1292_v16  ;;  %3181 = vmatprep.subr.mxu1 %v3587_v1 }
 0xb2f   :  { %3165 = vmatpush3.msra.mxu0 %v3695_v6  ;;  %3172 = vmatprep.mubr.msk.f32.mxu0 %vm3588_vm1, %v3587_v1 }
 0xb30   :  { %3166 = vmatprep.subr.mxu0 %v3587_v1  ;;  %3182 = vmatpush3.msra.mxu1 %v3749_v43 }
 0xb31   :  { %3167 = vmatpush3.msra.mxu0 %v3698_v7  ;;  %3197 = vmatprep.subr.mxu1 %v3587_v1 }
 0xb32   :  { %3168 = vmatprep.subr.mxu0 %v3587_v1 }
 0xb33   :  { %3169 = vmatpush3.msra.mxu0 %v3705_v8 }
 0xb34   :  { %3170 = vmatprep.subr.mxu0 %v3587_v1 }
 0xb35   :  { %3171 = vmatpush3.msra.mxu0 %v3711_v9 }
 0xb36   :  { %3173 = vmatmul.mubr.msk.f32.vlgmr.msra.gmra.mxu0 %vm300_vm3, %v1292_v16  ;;  %3186 = vmatprep.subr.mxu0 %v3587_v1 }
 0xb37   :  { %3187 = vmatpush3.msra.mxu0 %v3734_v39  ;;  %3194 = vmatprep.mubr.msk.f32.mxu0 %vm3588_vm1, %v3587_v1 }
 0xb38   :  { %3188 = vmatprep.subr.mxu0 %v3587_v1 }
 0xb39   :  { %3189 = vmatpush3.msra.mxu0 %v3738_v40 }
 0xb3a   :  { %3190 = vmatprep.subr.mxu0 %v3587_v1 }
 0xb3b   :  { %3191 = vmatpush3.msra.mxu0 %v3744_v42 }
 0xb3c   :  { %3192 = vmatprep.subr.mxu0 %v3587_v1 }
 0xb3d   :  { %3193 = vmatpush3.msra.mxu0 %v3759_v45 }
 0xb3e   :  { %3208 = vmatprep.subr.mxu0 %v3587_v1 }
 0xbe8   :  { %v1438_v17 = vpop.f32.mrf.mxu1 }
 0xbea   :  { %v3163_v18 = vpop.f32.mrf.mxu1 }
 0xbee   :  { %v1361_v19 = vpop.f32.mrf.mxu0 }
 0xbef   :  { %v1365_v20 = vadd.f32 %v3800_v52, %v1361_v19 }
 0xbf0   :  { %v3152_v22 = vpop.f32.mrf.mxu0 }
 0xbf1   :  { %v1442_v24 = vadd.f32 %v1438_v17, %v1365_v20 }
 0xbf3   :  { %3379 = vtanh.f32 %v1442_v24  ;;  %v2863_v32 = vmul.f32 -1.442695, %v1442_v24 }
 0xbf6   :  { %v1549_v27 = vpop.f32.mrf.mxu0 }
 0xbf7   :  { %v1553_v28 = vadd.f32 %v1549_v27, %v1478_v26 }
 0xbf8   :  { %v3174_v29 = vpop.f32.mrf.mxu0 }
 0xbf9   :  { %3381 = vtanh.f32 %v1553_v28  ;;  %v2865_v33 = vmul.f32 -1.442695, %v1553_v28 }
 0xbfa   :  { %3383 = vpow2.f32 %v2863_v32 }
 0xbfb   :  { %3385 = vpow2.f32 %v2865_v33 }
 0xc00   :  { %v3380_v30 = vpop.eup %3379 }
 0xc01   :  { %1452 = vrot.lane.b32.xlu1 %v3380_v30, %s3589_s5 }
 0xc06   :  { %v3382_v31 = vpop.eup %3381 }
 0xc07   :  { %1563 = vrot.lane.b32.xlu0 %v3382_v31, %s3589_s5  ;;  %v3384_v34 = vpop.eup %3383 }
 0xc08   :  { %v1446_v35 = vadd.f32 1.0, %v3384_v34  ;;  %v3386_v36 = vpop.eup %3385 }
 0xc09   :  { %v1557_v44 = vadd.f32 1.0, %v3386_v36  ;;  %v4037_v36 = vld [vmem:[#allocation11 + $0x18] sm:$0xff] }
 0xc0a   :  { %3387 = vrcp.f32 %v1446_v35 }
 0xc0b   :  { %3389 = vrcp.f32 %v1557_v44 }
 0xc17   :  { %v3388_v46 = vpop.eup %3387 }
 0xc18   :  { %v3390_v49 = vpop.eup %3389  ;;  %v1450_v53 = vmul.f32 %v3388_v46, %v3915_v0 }
 0xc19   :  { %v1561_v56 = vmul.f32 %v3390_v49, %v3919_v4 }
 0xc73   :  { %v1453_v47 = vpop.permute.xlu1 %1452 }
 0xc74   :  { %v1455_v48 = vmul.f32 %v3388_v46, %v1453_v47  ;;  %v4046_v47 = vld [vmem:[#allocation11 + $0x8] sm:$0xff] }
 0xc76   :  { %1457 = vrot.lane.b32.xlu1 %v1455_v48, %s3590_s13  ;;  %v4050_v48 = vld [vmem:[#allocation11] sm:$0xff] }
 0xc79   :  { %v1564_v50 = vpop.permute.xlu0 %1563 }
 0xc7a   :  { %v1566_v51 = vmul.f32 %v3390_v49, %v1564_v50 }
 0xc7c   :  { %1568 = vrot.lane.b32.xlu0 %v1566_v51, %s3590_s13 }
 0xce8   :  { %v1458_v54 = vpop.permute.xlu1 %1457 }
 0xce9   :  { %v3968_v55 = vadd.f32 %v1458_v54, %v1450_v53  ;;  %v2058_v54 = vld [vmem:[#allocation3 + $0xe] sm:$0x1] }
 0xceb   :  { %3391 = vtanh.f32 %v3968_v55 }
 0xcee   :  { %v1569_v57 = vpop.permute.xlu0 %1568 }
 0xcef   :  { %v3972_v58 = vadd.f32 %v1569_v57, %v1561_v56  ;;  %v2060_v57 = vrot.slane %v2058_v54, 7 }
 0xcf1   :  { %3393 = vtanh.f32 %v3972_v58 }
 0xcf8   :  { %v3392_v59 = vpop.eup %3391 }
 0xcf9   :  { %1463 = vrot.lane.b32.xlu1 %v3392_v59, %s3589_s5 }
 0xcfe   :  { %v3394_v60 = vpop.eup %3393 }
 0xcff   :  { %1574 = vrot.lane.b32.xlu0 %v3394_v60, %s3589_s5 }
 0xd6b   :  { %v1464_v61 = vpop.permute.xlu1 %1463 }
 0xd6c   :  { %v1466_v62 = vmul.f32 %v3388_v46, %v1464_v61  ;;  %v4040_v46 = vld [vmem:[#allocation11 + $0x10] sm:$0xff] }
 0xd6e   :  { %1468 = vrot.lane.b32.xlu1 %v1466_v62, %s3590_s13 }
 0xd71   :  { %v1575_v63 = vpop.permute.xlu0 %1574 }
 0xd72   :  { %v1577_v0 = vmul.f32 %v3390_v49, %v1575_v63 }
 0xd74   :  { %1583 = vrot.lane.b32.xlu0 %v1577_v0, %s3590_s13 }
 0xde0   :  { %v1469_v2 = vpop.permute.xlu1 %1468 }
 0xde1   :  { %1471 = vst.msk [vmem:[#allocation4 + $0x3] sm:$0x1] %vm593_vm5, %v1469_v2  ;;  %3195 = vmatmul.mubr.msk.f32.vlgmr.msra.gmra.mxu0 %vm300_vm3, %v1469_v2 }
 0xde2   :  { %1472 = vst.msk [vmem:[#allocation4 + $0xa] sm:$0x2] %vm595_vm6, %v1469_v2  ;;  %3209 = vmatpush3.msra.mxu0 %v3730_v37  ;;  %3216 = vmatprep.mubr.msk.f32.mxu0 %vm3588_vm1, %v3587_v1  ;;  %v1766_v37 = vld [vmem:[#allocation3 + $0xd] sm:$0x1] }
 0xde3   :  { %3210 = vmatprep.subr.mxu0 %v3587_v1 }
 0xde4   :  { %3211 = vmatpush3.msra.mxu0 %v3732_v38 }
 0xde5   :  { %3212 = vmatprep.subr.mxu0 %v3587_v1 }
 0xde6   :  { %v1584_v3 = vpop.permute.xlu0 %1583  ;;  %3213 = vmatpush3.msra.mxu0 %v3741_v41  ;;  %v1768_v41 = vrot.slane %v1766_v37, 7 }
 0xde7   :  { %3184 = vmatmul.mubr.msk.f32.vlgmr.msra.gmra.mxu1 %vm300_vm3, %v1584_v3  ;;  %3214 = vmatprep.subr.mxu0 %v3587_v1 }
 0xde8   :  { %3198 = vmatpush3.msra.mxu1 %v3695_v6  ;;  %3205 = vmatprep.mubr.msk.f32.mxu1 %vm3588_vm1, %v3587_v1 }
 0xde9   :  { %3199 = vmatprep.subr.mxu1 %v3587_v1  ;;  %3215 = vmatpush3.msra.mxu0 %v3749_v43 }
 0xdea   :  { %3200 = vmatpush3.msra.mxu1 %v3698_v7  ;;  %3230 = vmatprep.subr.mxu0 %v3587_v1 }
 0xdeb   :  { %3201 = vmatprep.subr.mxu1 %v3587_v1 }
 0xdec   :  { %3202 = vmatpush3.msra.mxu1 %v3705_v8 }
 0xded   :  { %3203 = vmatprep.subr.mxu1 %v3587_v1 }
 0xdee   :  { %3204 = vmatpush3.msra.mxu1 %v3711_v9 }
 0xdef   :  { %3206 = vmatmul.mubr.msk.f32.vlgmr.msra.gmra.mxu1 %vm300_vm3, %v1584_v3  ;;  %3219 = vmatprep.subr.mxu1 %v3587_v1 }
 0xdf0   :  { %3220 = vmatpush3.msra.mxu1 %v3734_v39  ;;  %3227 = vmatprep.mubr.msk.f32.mxu1 %vm3588_vm1, %v3587_v1 }
 0xdf1   :  { %3221 = vmatprep.subr.mxu1 %v3587_v1 }
 0xdf2   :  { %3222 = vmatpush3.msra.mxu1 %v3738_v40  ;;  %v1765_v40 = vld [vmem:[#allocation3 + $0x5] sm:$0x1] }
 0xdf3   :  { %3223 = vmatprep.subr.mxu1 %v3587_v1  ;;  %v1770_v43 = vsel %vm294_vm4, %v1765_v40, %v1768_v41 }
 0xdf4   :  { %3224 = vmatpush3.msra.mxu1 %v3744_v42 }
 0xdf5   :  { %3225 = vmatprep.subr.mxu1 %v3587_v1 }
 0xdf6   :  { %3226 = vmatpush3.msra.mxu1 %v3759_v45 }
 0xdf7   :  { %3241 = vmatprep.subr.mxu1 %v3587_v1 }
 0xea1   :  { %v1730_v6 = vpop.f32.mrf.mxu0 }
 0xea3   :  { %v3196_v7 = vpop.f32.mrf.mxu0 }
 0xea7   :  { %v1653_v8 = vpop.f32.mrf.mxu1 }
 0xea8   :  { %v1657_v9 = vadd.f32 %v3800_v52, %v1653_v8 }
 0xea9   :  { %v3185_v38 = vpop.f32.mrf.mxu1 }
 0xeaa   :  { %v1734_v39 = vadd.f32 %v1730_v6, %v1657_v9 }
 0xeac   :  { %3395 = vtanh.f32 %v1734_v39  ;;  %v2868_v11 = vmul.f32 -1.442695, %v1734_v39 }
 0xeaf   :  { %v1841_v42 = vpop.f32.mrf.mxu1 }
 0xeb0   :  { %v1845_v4 = vadd.f32 %v1841_v42, %v1770_v43 }
 0xeb1   :  { %v3207_v5 = vpop.f32.mrf.mxu1 }
 0xeb2   :  { %3397 = vtanh.f32 %v1845_v4  ;;  %v2870_v12 = vmul.f32 -1.442695, %v1845_v4 }
 0xeb3   :  { %3399 = vpow2.f32 %v2868_v11  ;;  %v2245_v11 = vld [vmem:[#allocation14 + $0x18] sm:$0xff] }
 0xeb4   :  { %3401 = vpow2.f32 %v2870_v12  ;;  %v2244_v12 = vld [vmem:[#allocation14 + $0x10] sm:$0xff] }
 0xeb9   :  { %v3396_v45 = vpop.eup %3395 }
 0xeba   :  { %1744 = vrot.lane.b32.xlu1 %v3396_v45, %s3589_s5 }
 0xebf   :  { %v3398_v10 = vpop.eup %3397 }
 0xec0   :  { %1855 = vrot.lane.b32.xlu0 %v3398_v10, %s3589_s5  ;;  %v3400_v13 = vpop.eup %3399 }
 0xec1   :  { %v1738_v14 = vadd.f32 1.0, %v3400_v13  ;;  %v3402_v15 = vpop.eup %3401  ;;  %v2165_v13 = vld [vmem:[#allocation12 + $0x18] sm:$0xff] }
 0xec2   :  { %v1849_v16 = vadd.f32 1.0, %v3402_v15  ;;  %v2243_v15 = vld [vmem:[#allocation14 + $0x8] sm:$0xff] }
 0xec3   :  { %3403 = vrcp.f32 %v1738_v14  ;;  %v2164_v14 = vld [vmem:[#allocation12 + $0x10] sm:$0xff] }
 0xec4   :  { %3405 = vrcp.f32 %v1849_v16 }
 0xed0   :  { %v3404_v17 = vpop.eup %3403 }
 0xed1   :  { %v3406_v20 = vpop.eup %3405  ;;  %v1742_v24 = vmul.f32 %v3404_v17, %v3968_v55 }
 0xed2   :  { %v1853_v26 = vmul.f32 %v3406_v20, %v3972_v58  ;;  %v2057_v58 = vld [vmem:[#allocation3 + $0x6] sm:$0x1] }
 0xed3   :  { %v2062_v59 = vsel %vm294_vm4, %v2057_v58, %v2060_v57 }
 0xf2c   :  { %v1745_v18 = vpop.permute.xlu1 %1744 }
 0xf2d   :  { %v1747_v19 = vmul.f32 %v3404_v17, %v1745_v18 }
 0xf2f   :  { %1749 = vrot.lane.b32.xlu1 %v1747_v19, %s3590_s13  ;;  %v2163_v19 = vld [vmem:[#allocation12 + $0x8] sm:$0xff] }
 0xf32   :  { %v1856_v21 = vpop.permute.xlu0 %1855 }
 0xf33   :  { %v1858_v22 = vmul.f32 %v3406_v20, %v1856_v21 }
 0xf35   :  { %1860 = vrot.lane.b32.xlu0 %v1858_v22, %s3590_s13 }
 0xfa1   :  { %v1750_v23 = vpop.permute.xlu1 %1749 }
 0xfa2   :  { %v4021_v25 = vadd.f32 %v1750_v23, %v1742_v24 }
 0xfa4   :  { %3407 = vtanh.f32 %v4021_v25 }
 0xfa7   :  { %v1861_v27 = vpop.permute.xlu0 %1860 }
 0xfa8   :  { %v4025_v28 = vadd.f32 %v1861_v27, %v1853_v26 }
 0xfaa   :  { %3409 = vtanh.f32 %v4025_v28 }
 0xfb1   :  { %v3408_v29 = vpop.eup %3407 }
 0xfb2   :  { %1755 = vrot.lane.b32.xlu1 %v3408_v29, %s3589_s5 }
 0xfb7   :  { %v3410_v30 = vpop.eup %3409 }
 0xfb8   :  { %1866 = vrot.lane.b32.xlu0 %v3410_v30, %s3589_s5  ;;  %v4115_v30 = vld [vmem:[%s4164_s6] ss:$0 sm:$0xff]  ;;  %s3592_s6 = smov 96  }
0x1024   :  { %v1756_v31 = vpop.permute.xlu1 %1755 }
0x1025   :  { %v1758_v32 = vmul.f32 %v3404_v17, %v1756_v31  ;;  %v2242_v17 = vld [vmem:[#allocation14] sm:$0xff] }
0x1027   :  { %1760 = vrot.lane.b32.xlu1 %v1758_v32, %s3590_s13  ;;  %v2350_v32 = vld [vmem:[#allocation3 + $0xf] sm:$0x1] }
0x102a   :  { %v1867_v33 = vpop.permute.xlu0 %1866 }
0x102b   :  { %v1869_v34 = vmul.f32 %v3406_v20, %v1867_v33  ;;  %v2162_v20 = vld [vmem:[#allocation12] sm:$0xff] }
0x102d   :  { %1875 = vrot.lane.b32.xlu0 %v1869_v34, %s3590_s13 }
0x1099   :  { %v1761_v35 = vpop.permute.xlu1 %1760 }
0x109a   :  { %1763 = vst.msk [vmem:[#allocation4 + $0x4] sm:$0x1] %vm593_vm5, %v1761_v35  ;;  %3228 = vmatmul.mubr.msk.f32.vlgmr.msra.gmra.mxu1 %vm300_vm3, %v1761_v35 }
0x109b   :  { %1764 = vst.msk [vmem:[#allocation4 + $0xb] sm:$0x2] %vm595_vm6, %v1761_v35  ;;  %3249 = vmatprep.mubr.msk.f32.mxu1 %vm3588_vm1, %v3587_v1  ;;  %3242 = vmatpush3.msra.mxu1 %v2165_v13  ;;  %v2352_v35 = vrot.slane %v2350_v32, 7  ;;  %v2663_v32 = vlaneseq }
0x109c   :  { %3243 = vmatprep.subr.mxu1 %v3587_v1 }
0x109d   :  { %3244 = vmatpush3.msra.mxu1 %v2164_v14 }
0x109e   :  { %3245 = vmatprep.subr.mxu1 %v3587_v1 }
0x109f   :  { %v1876_v44 = vpop.permute.xlu0 %1875  ;;  %3246 = vmatpush3.msra.mxu1 %v2163_v19 }
0x10a0   :  { %3217 = vmatmul.mubr.msk.f32.vlgmr.msra.gmra.mxu0 %vm300_vm3, %v1876_v44  ;;  %3247 = vmatprep.subr.mxu1 %v3587_v1 }
0x10a1   :  { %3231 = vmatpush3.msra.mxu0 %v4037_v36  ;;  %3238 = vmatprep.mubr.msk.f32.mxu0 %vm3588_vm1, %v3587_v1 }
0x10a2   :  { %3232 = vmatprep.subr.mxu0 %v3587_v1  ;;  %3248 = vmatpush3.msra.mxu1 %v2162_v20 }
0x10a3   :  { %3233 = vmatpush3.msra.mxu0 %v4040_v46  ;;  %3263 = vmatprep.subr.mxu1 %v3587_v1 }
0x10a4   :  { %3234 = vmatprep.subr.mxu0 %v3587_v1 }
0x10a5   :  { %3235 = vmatpush3.msra.mxu0 %v4046_v47 }
0x10a6   :  { %3236 = vmatprep.subr.mxu0 %v3587_v1 }
0x10a7   :  { %3237 = vmatpush3.msra.mxu0 %v4050_v48 }
0x10a8   :  { %3239 = vmatmul.mubr.msk.f32.vlgmr.msra.gmra.mxu0 %vm300_vm3, %v1876_v44  ;;  %3252 = vmatprep.subr.mxu0 %v3587_v1 }
0x10a9   :  { %3260 = vmatprep.mubr.msk.f32.mxu0 %vm3588_vm1, %v3587_v1  ;;  %3253 = vmatpush3.msra.mxu0 %v2245_v11 }
0x10aa   :  { %3254 = vmatprep.subr.mxu0 %v3587_v1 }
0x10ab   :  { %3255 = vmatpush3.msra.mxu0 %v2244_v12 }
0x10ac   :  { %3256 = vmatprep.subr.mxu0 %v3587_v1 }
0x10ad   :  { %3257 = vmatpush3.msra.mxu0 %v2243_v15 }
0x10ae   :  { %3258 = vmatprep.subr.mxu0 %v3587_v1 }
0x10af   :  { %3259 = vmatpush3.msra.mxu0 %v2242_v17 }
0x10b0   :  { %3274 = vmatprep.subr.mxu0 %v3587_v1 }
0x115a   :  { %v2022_v49 = vpop.f32.mrf.mxu1 }
0x115c   :  { %v3229_v50 = vpop.f32.mrf.mxu1 }
0x1160   :  { %v1945_v51 = vpop.f32.mrf.mxu0 }
0x1161   :  { %v1949_v53 = vadd.f32 %v3800_v52, %v1945_v51 }
0x1162   :  { %v3218_v55 = vpop.f32.mrf.mxu0 }
0x1163   :  { %v2026_v56 = vadd.f32 %v2022_v49, %v1949_v53 }
0x1165   :  { %3411 = vtanh.f32 %v2026_v56  ;;  %v2873_v2 = vmul.f32 -1.442695, %v2026_v56 }
0x1168   :  { %v2133_v60 = vpop.f32.mrf.mxu0 }
0x1169   :  { %v2137_v61 = vadd.f32 %v2133_v60, %v2062_v59 }
0x116a   :  { %v3240_v62 = vpop.f32.mrf.mxu0 }
0x116b   :  { %3413 = vtanh.f32 %v2137_v61  ;;  %v2875_v52 = vmul.f32 -1.442695, %v2137_v61 }
0x116c   :  { %3415 = vpow2.f32 %v2873_v2 }
0x116d   :  { %3417 = vpow2.f32 %v2875_v52 }
0x1172   :  { %v3412_v63 = vpop.eup %3411 }
0x1173   :  { %2036 = vrot.lane.b32.xlu1 %v3412_v63, %s3589_s5 }
0x1178   :  { %v3414_v0 = vpop.eup %3413 }
0x1179   :  { %2147 = vrot.lane.b32.xlu0 %v3414_v0, %s3589_s5  ;;  %v3416_v3 = vpop.eup %3415 }
0x117a   :  { %v2030_v6 = vadd.f32 1.0, %v3416_v3  ;;  %v3418_v7 = vpop.eup %3417 }
0x117b   :  { %v2141_v8 = vadd.f32 1.0, %v3418_v7 }
0x117c   :  { %3419 = vrcp.f32 %v2030_v6 }
0x117d   :  { %3421 = vrcp.f32 %v2141_v8 }
0x1189   :  { %v3420_v9 = vpop.eup %3419 }
0x118a   :  { %v3422_v39 = vpop.eup %3421  ;;  %v2034_v43 = vmul.f32 %v3420_v9, %v4021_v25 }
0x118b   :  { %v2145_v5 = vmul.f32 %v3422_v39, %v4025_v28 }
0x11e5   :  { %v2037_v37 = vpop.permute.xlu1 %2036 }
0x11e6   :  { %v2039_v38 = vmul.f32 %v3420_v9, %v2037_v37 }
0x11e8   :  { %2041 = vrot.lane.b32.xlu1 %v2039_v38, %s3590_s13 }
0x11eb   :  { %v2148_v41 = vpop.permute.xlu0 %2147 }
0x11ec   :  { %v2150_v40 = vmul.f32 %v3422_v39, %v2148_v41 }
0x11ee   :  { %2152 = vrot.lane.b32.xlu0 %v2150_v40, %s3590_s13 }
0x125a   :  { %v2042_v42 = vpop.permute.xlu1 %2041 }
0x125b   :  { %v4066_v4 = vadd.f32 %v2042_v42, %v2034_v43 }
0x125d   :  { %3423 = vtanh.f32 %v4066_v4 }
0x1260   :  { %v2153_v45 = vpop.permute.xlu0 %2152 }
0x1261   :  { %v4070_v10 = vadd.f32 %v2153_v45, %v2145_v5 }
0x1263   :  { %3425 = vtanh.f32 %v4070_v10 }
0x126a   :  { %v3424_v16 = vpop.eup %3423 }
0x126b   :  { %2047 = vrot.lane.b32.xlu1 %v3424_v16, %s3589_s5 }
0x1270   :  { %v3426_v18 = vpop.eup %3425 }
0x1271   :  { %2158 = vrot.lane.b32.xlu0 %v3426_v18, %s3589_s5 }
0x12dd   :  { %v2048_v21 = vpop.permute.xlu1 %2047 }
0x12de   :  { %v2050_v22 = vmul.f32 %v3420_v9, %v2048_v21 }
0x12e0   :  { %2052 = vrot.lane.b32.xlu1 %v2050_v22, %s3590_s13 }
0x12e3   :  { %v2159_v24 = vpop.permute.xlu0 %2158 }
0x12e4   :  { %v2161_v23 = vmul.f32 %v3422_v39, %v2159_v24 }
0x12e6   :  { %2167 = vrot.lane.b32.xlu0 %v2161_v23, %s3590_s13  ;;  %v2656_v23 = vld [vmem:[#allocation5] sm:$0x1] }
0x1352   :  { %v2053_v25 = vpop.permute.xlu1 %2052 }
0x1353   :  { %2055 = vst.msk [vmem:[#allocation4 + $0x5] sm:$0x1] %vm593_vm5, %v2053_v25  ;;  %3261 = vmatmul.mubr.msk.f32.vlgmr.msra.gmra.mxu0 %vm300_vm3, %v2053_v25 }
0x1354   :  { %2056 = vst.msk [vmem:[#allocation4 + $0xc] sm:$0x2] %vm595_vm6, %v2053_v25  ;;  %3275 = vmatpush3.msra.mxu0 %v2165_v13  ;;  %3282 = vmatprep.mubr.msk.f32.mxu0 %vm3588_vm1, %v3587_v1  ;;  %v3591_v25 = vmov 0  }
0x1355   :  { %3276 = vmatprep.subr.mxu0 %v3587_v1  ;;  %3322 = vset.pattern.permute.xlu0 %v3591_v25 }
0x1356   :  { %3277 = vmatpush3.msra.mxu0 %v2164_v14 }
0x1357   :  { %3278 = vmatprep.subr.mxu0 %v3587_v1 }
0x1358   :  { %v2168_v26 = vpop.permute.xlu0 %2167  ;;  %3279 = vmatpush3.msra.mxu0 %v2163_v19 }
0x1359   :  { %3250 = vmatmul.mubr.msk.f32.vlgmr.msra.gmra.mxu1 %vm300_vm3, %v2168_v26  ;;  %3280 = vmatprep.subr.mxu0 %v3587_v1 }
0x135a   :  { %3264 = vmatpush3.msra.mxu1 %v4037_v36  ;;  %3271 = vmatprep.mubr.msk.f32.mxu1 %vm3588_vm1, %v3587_v1  ;;  %v2349_v36 = vld [vmem:[#allocation3 + $0x7] sm:$0x1] }
0x135b   :  { %3265 = vmatprep.subr.mxu1 %v3587_v1  ;;  %3281 = vmatpush3.msra.mxu0 %v2162_v20  ;;  %v2354_v44 = vsel %vm294_vm4, %v2349_v36, %v2352_v35 }
0x135c   :  { %3266 = vmatpush3.msra.mxu1 %v4040_v46  ;;  %3296 = vmatprep.subr.mxu0 %v3587_v1 }
0x135d   :  { %3267 = vmatprep.subr.mxu1 %v3587_v1 }
0x135e   :  { %3268 = vmatpush3.msra.mxu1 %v4046_v47 }
0x135f   :  { %3269 = vmatprep.subr.mxu1 %v3587_v1 }
0x1360   :  { %3270 = vmatpush3.msra.mxu1 %v4050_v48 }
0x1361   :  { %3272 = vmatmul.mubr.msk.f32.vlgmr.msra.gmra.mxu1 %vm300_vm3, %v2168_v26  ;;  %3285 = vmatprep.subr.mxu1 %v3587_v1 }
0x1362   :  { %3286 = vmatpush3.msra.mxu1 %v2245_v11  ;;  %3293 = vmatprep.mubr.msk.f32.mxu1 %vm3588_vm1, %v3587_v1 }
0x1363   :  { %3287 = vmatprep.subr.mxu1 %v3587_v1 }
0x1364   :  { %3288 = vmatpush3.msra.mxu1 %v2244_v12 }
0x1365   :  { %3289 = vmatprep.subr.mxu1 %v3587_v1 }
0x1366   :  { %3290 = vmatpush3.msra.mxu1 %v2243_v15 }
0x1367   :  { %3291 = vmatprep.subr.mxu1 %v3587_v1 }
0x1368   :  { %3292 = vmatpush3.msra.mxu1 %v2242_v17 }
0x1369   :  { %3301 = vmatprep.subr.mxu1 %v3587_v1 }
0x1413   :  { %v2314_v27 = vpop.f32.mrf.mxu0 }
0x1415   :  { %v3262_v28 = vpop.f32.mrf.mxu0 }
0x1419   :  { %v2237_v29 = vpop.f32.mrf.mxu1 }
0x141a   :  { %v2241_v31 = vadd.f32 %v4115_v30, %v2237_v29 }
0x141b   :  { %v3251_v33 = vpop.f32.mrf.mxu1 }
0x141c   :  { %v2318_v34 = vadd.f32 %v2314_v27, %v2241_v31  ;;  %v2655_v31 = vld [vmem:[%s4165_s7] sm:$0x1]  ;;  %v2664_v33 = vshrl.u32 %v2663_v32, 7  ;;  %s3552_s7 = scalar_lea.vmem %s2827_s20, 32 }
0x141d   :  { %p3553_p11 = scmp.ne.s32.totalorder %s2827_s20, %s3552_s7  ;;  %p3558_p13 = scmp.lt.s32.totalorder %s3552_s7, %s3552_s7 }
0x141e   :  { %3427 = vtanh.f32 %v2318_v34  ;;  %v2878_v51 = vmul.f32 -1.442695, %v2318_v34  ;;  %v2665_v34 = vsub.s32 0, %v2664_v33 }
0x141f   :  { %p3559_p0 = por %p3558_p13, %p3557_p12 }
0x1421   :  { %v2425_v46 = vpop.f32.mrf.mxu1  ;;  %p3560_p1 = pnand %p3559_p0, %p3553_p11 }
0x1422   :  { %v2429_v47 = vadd.f32 %v2425_v46, %v2354_v44 }
0x1423   :  { %v3273_v48 = vpop.f32.mrf.mxu1 }
0x1424   :  { %3429 = vtanh.f32 %v2429_v47  ;;  %v2880_v53 = vmul.f32 -1.442695, %v2429_v47 }
0x1425   :  { %3431 = vpow2.f32 %v2878_v51 }
0x1426   :  { %3433 = vpow2.f32 %v2880_v53 }
0x142b   :  { %v3428_v49 = vpop.eup %3427 }
0x142c   :  { %2328 = vrot.lane.b32.xlu1 %v3428_v49, %s3589_s5 }
0x1431   :  { %v3430_v50 = vpop.eup %3429 }
0x1432   :  { %2439 = vrot.lane.b32.xlu0 %v3430_v50, %s3589_s5  ;;  %v3432_v54 = vpop.eup %3431 }
0x1433   :  { %v2322_v55 = vadd.f32 1.0, %v3432_v54  ;;  %v3434_v56 = vpop.eup %3433 }
0x1434   :  { %v2433_v57 = vadd.f32 1.0, %v3434_v56 }
0x1435   :  { %3435 = vrcp.f32 %v2322_v55 }
0x1436   :  { %3437 = vrcp.f32 %v2433_v57 }
0x1442   :  { %v3436_v58 = vpop.eup %3435 }
0x1443   :  { %v3438_v61 = vpop.eup %3437  ;;  %v2326_v0 = vmul.f32 %v3436_v58, %v4066_v4 }
0x1444   :  { %v2437_v3 = vmul.f32 %v3438_v61, %v4070_v10 }
0x149e   :  { %v2329_v59 = vpop.permute.xlu1 %2328 }
0x149f   :  { %v2331_v60 = vmul.f32 %v3436_v58, %v2329_v59 }
0x14a1   :  { %2333 = vrot.lane.b32.xlu1 %v2331_v60, %s3590_s13 }
0x14a4   :  { %v2440_v62 = vpop.permute.xlu0 %2439 }
0x14a5   :  { %v2442_v63 = vmul.f32 %v3438_v61, %v2440_v62 }
0x14a7   :  { %2444 = vrot.lane.b32.xlu0 %v2442_v63, %s3590_s13 }
0x1513   :  { %v2334_v2 = vpop.permute.xlu1 %2333 }
0x1514   :  { %v2336_v52 = vadd.f32 %v2334_v2, %v2326_v0 }
0x1516   :  { %3439 = vtanh.f32 %v2336_v52 }
0x1519   :  { %v2445_v6 = vpop.permute.xlu0 %2444 }
0x151a   :  { %v2447_v7 = vadd.f32 %v2445_v6, %v2437_v3 }
0x151c   :  { %3441 = vtanh.f32 %v2447_v7 }
0x1523   :  { %v3440_v8 = vpop.eup %3439 }
0x1524   :  { %2339 = vrot.lane.b32.xlu1 %v3440_v8, %s3589_s5 }
0x1529   :  { %v3442_v9 = vpop.eup %3441 }
0x152a   :  { %2450 = vrot.lane.b32.xlu0 %v3442_v9, %s3589_s5 }
0x1596   :  { %v2340_v37 = vpop.permute.xlu1 %2339 }
0x1597   :  { %v2342_v38 = vmul.f32 %v3436_v58, %v2340_v37 }
0x1599   :  { %2344 = vrot.lane.b32.xlu1 %v2342_v38, %s3590_s13 }
0x159c   :  { %v2451_v39 = vpop.permute.xlu0 %2450 }
0x159d   :  { %v2453_v41 = vmul.f32 %v3438_v61, %v2451_v39 }
0x159f   :  { %2459 = vrot.lane.b32.xlu0 %v2453_v41, %s3590_s13 }
0x160b   :  { %v2345_v40 = vpop.permute.xlu1 %2344 }
0x160c   :  { %2347 = vst.msk [vmem:[#allocation4 + $0x6] sm:$0x1] %vm593_vm5, %v2345_v40  ;;  %3294 = vmatmul.mubr.msk.f32.vlgmr.msra.gmra.mxu1 %vm300_vm3, %v2345_v40 }
0x160d   :  { %2348 = vst.msk [vmem:[#allocation4 + $0xd] sm:$0x2] %vm595_vm6, %v2345_v40  ;;  %3303 = vmatprep.mubr.msk.f32.mxu1 %vm3588_vm1, %v3587_v1 }
0x1611   :  { %v2460_v43 = vpop.permute.xlu0 %2459 }
0x1612   :  { %2643 = vst.msk [vmem:[#allocation2] sm:$0x3] %vm107_vm0, %v2460_v43  ;;  %3283 = vmatmul.mubr.msk.f32.vlgmr.msra.gmra.mxu0 %vm300_vm3, %v2460_v43 }
0x1613   :  { %3298 = vmatprep.mubr.msk.f32.mxu0 %vm3588_vm1, %v3587_v1 }
0x16cc   :  { %v2606_v42 = vpop.f32.mrf.mxu1 }
0x16ce   :  { %v3295_v4 = vpop.f32.mrf.mxu1 }
0x16d2   :  { %v2529_v5 = vpop.f32.mrf.mxu0 }
0x16d3   :  { %v2533_v45 = vadd.f32 %v4115_v30, %v2529_v5 }
0x16d4   :  { %v3284_v10 = vpop.f32.mrf.mxu0 }
0x16d5   :  { %v2610_v11 = vadd.f32 %v2606_v42, %v2533_v45 }
0x16d7   :  { %3443 = vtanh.f32 %v2610_v11  ;;  %v2883_v13 = vmul.f32 -1.442695, %v2610_v11 }
0x16d9   :  { %3445 = vpow2.f32 %v2883_v13 }
0x16e4   :  { %v3444_v12 = vpop.eup %3443 }
0x16e5   :  { %2620 = vrot.lane.b32.xlu0 %v3444_v12, %s3589_s5 }
0x16e6   :  { %v3446_v14 = vpop.eup %3445 }
0x16e7   :  { %v2614_v15 = vadd.f32 1.0, %v3446_v14 }
0x16e9   :  { %3447 = vrcp.f32 %v2614_v15 }
0x16f6   :  { %v3448_v16 = vpop.eup %3447 }
0x16f7   :  { %v2618_v1 = vmul.f32 %v3448_v16, %v2336_v52 }
0x1757   :  { %v2621_v17 = vpop.permute.xlu0 %2620 }
0x1758   :  { %v2623_v18 = vmul.f32 %v3448_v16, %v2621_v17 }
0x175a   :  { %2625 = vrot.lane.b32.xlu1 %v2623_v18, %s3590_s13 }
0x17cc   :  { %v2626_v19 = vpop.permute.xlu1 %2625 }
0x17cd   :  { %v2628_v20 = vadd.f32 %v2626_v19, %v2618_v1 }
0x17cf   :  { %3449 = vtanh.f32 %v2628_v20 }
0x17dc   :  { %v3450_v21 = vpop.eup %3449 }
0x17dd   :  { %2631 = vrot.lane.b32.xlu0 %v3450_v21, %s3589_s5 }
0x17e1   :  { %2660 = vperm.xlu0 %3322, %v2656_v23  }
0x184f   :  { %v2632_v22 = vpop.permute.xlu0 %2631 }
0x1850   :  { %v2634_v24 = vmul.f32 %v3448_v16, %v2632_v22 }
0x1852   :  { %2636 = vrot.lane.b32.xlu1 %v2634_v24, %s3590_s13 }
0x1856   :  { %2645 = vrot.lane.b32.xlu1 %v2447_v7, %s3592_s6 }
0x185a   :  { %2651 = vrot.lane.b32.xlu1 %v2628_v20, %s3592_s6 }
0x185c   :  { %v2661_v35 = vpop.permute.xlu0 %2660 }
0x185d   :  { %v2666_v36 = vrot.slane %v2661_v35, %v2665_v34 }
0x18c4   :  { %v2637_v26 = vpop.permute.xlu1 %2636 }
0x18c5   :  { %2639 = vst.msk [vmem:[#allocation4 + $0x7] sm:$0x1] %vm593_vm5, %v2637_v26 }
0x18c6   :  { %2640 = vst.msk [vmem:[#allocation4 + $0xe] sm:$0x2] %vm595_vm6, %v2637_v26 }
0x18c7   :  { %2649 = vst.msk [vmem:[#allocation2 + $0x4] sm:$0x3] %vm107_vm0, %v2637_v26 }
0x18c8   :  { %v2646_v27 = vpop.permute.xlu1 %2645 }
0x18c9   :  { %2648 = vst.msk [vmem:[#allocation2 + $0x2] sm:$0x3] %vm107_vm0, %v2646_v27 }
0x18cc   :  { %v2652_v28 = vpop.permute.xlu1 %2651  ;;  %v2657_v29 = vld [vmem:[#allocation4] sm:$0xff] }
0x18cd   :  { %v2745_v30 = vld [vmem:[#allocation4 + $0x8] sm:$0xff]  ;;  %2654 = vst.msk [vmem:[#allocation2 + $0x6] sm:$0x3] %vm107_vm0, %v2652_v28  ;;  %3297 = vmatpush3.xpose.msk.msra.mxu0 %vm300_vm3, %v2657_v29 }
0x18ce   :  { %3302 = vmatpush3.xpose.msk.msra.mxu1 %vm300_vm3, %v2745_v30 }
0x18d0   :  { %3299 = vmatmul.mubr.msk.f32.vlgmr.msra.gmra.mxu0 %vm300_vm3, %v2655_v31 }
0x18d1   :  { %3304 = vmatmul.mubr.msk.f32.vlgmr.msra.gmra.mxu1 %vm300_vm3, %v2655_v31 }
0x1990   :  { %v2739_v44 = vpop.f32.mrf.mxu0 }
0x1991   :  { %v2815_v46 = vpop.f32.mrf.mxu1  ;;  %v2740_v47 = vadd.f32 %v2739_v44, %v2666_v36 }
0x1992   :  { %v2816_v48 = vadd.f32 %v2815_v46, %v2666_v36  ;;  %v3300_v49 = vpop.f32.mrf.mxu0 }
0x1993   :  { %v3305_v50 = vpop.f32.mrf.mxu1  ;;  %2744 = vst.msk [vmem:[#allocation15] sm:$0x1] %vm2743_vm7, %v2740_v47 }
0x1994   :  { %2820 = vst.msk [vmem:[#allocation15 + $0x1] sm:$0x1] %vm2743_vm7, %v2816_v48 }
0x1995   :  { %3563 = shalt.err (!%p3560_p1)
}
0x1996   :  { %s3594_s21 = smov 16   ;;  %s3595_s22 = smov 1  }
0x1997   :  { %2832 = dma.vmem_to_hbm [thread:$0]  %s2827_s20, 32, %s4167_s9, [#allocation8], %s3594_s21, %s3594_s21, %s3595_s22  }
0x1998   :  { %3578 = dma.done.wait [#allocation8], 32  }
0x1999   :  { %3579 = vsyncadd [#allocation8], 4294967264 }
0x199a   :  { %2836 = vsyncpa [#allocation7], 1 }
0x199b   :  { %2837 = vsyncpa [#allocation10], 1 }
0x199c   :  { %2838 = vsyncpa [#allocation13], 1 }
0x199d   :  { %2839 = vsyncpa [#allocation8], 1 }

</bundles_post_ra>
